<compile_context>
chip_gen: v7x
topology: tpu7x:2x2x1
jax: 0.10.0
libtpu: 0.0.40
codegen_flags: <defaults>
</compile_context>

<pallas_src>
import functools

import jax
import jax.numpy as jnp
from jax.experimental import pallas as pl
from jax.experimental.pallas import tpu as pltpu

LEAKY_SLOPE = 0.2


def _leaky(x):
    return jnp.where(x >= 0, x, LEAKY_SLOPE * x)


def _cparams():
    return pltpu.CompilerParams(dimension_semantics=("parallel",))


# ----------------------------------------------------------------------------- kernels


def _minmax_kernel(x_ref, mn_ref, mx_ref):
    # Global min / max of the mel tensor (matches torch: mel.min(), mel.max()).
    x = x_ref[...]
    mn_ref[...] = jnp.broadcast_to(jnp.min(x), (1, 1))
    mx_ref[...] = jnp.broadcast_to(jnp.max(x), (1, 1))


def _conv1d_kernel(x_ref, w_ref, b_ref, o_ref, *, dilation, ksize, l_out, act):
    # x_ref: (1, Lp, Cin)   w_ref: (K, Cin, Cout)   b_ref: (1, Cout)   o_ref: (1, Lout, Cout)
    c_out = w_ref.shape[-1]
    acc = jnp.zeros((l_out, c_out), jnp.float32)
    for k in range(ksize):  # static unroll over kernel taps
        s = k * dilation
        acc = acc + jnp.dot(
            x_ref[0, s : s + l_out, :], w_ref[k], preferred_element_type=jnp.float32
        )
    acc = acc + b_ref[...]  # (1, Cout) broadcasts over L
    if act == "leaky":
        acc = _leaky(acc)
    o_ref[0, :, :] = acc.astype(o_ref.dtype)


def _gated_res_kernel(x_ref, w_ref, b_ref, o_ref, *, dilation, l_out, c):
    # Fused: sigmoid(gate_conv(x)) * leaky_relu(conv(x), 0.2) + x
    # conv and gate weights are concatenated along Cout: w_ref: (3, C, 2C), b_ref: (1, 2C)
    acc = jnp.zeros((l_out, 2 * c), jnp.float32)
    for k in range(3):
        s = k * dilation
        acc = acc + jnp.dot(
            x_ref[0, s : s + l_out, :], w_ref[k], preferred_element_type=jnp.float32
        )
    acc = acc + b_ref[...]
    conv_o = acc[:, :c]
    gate_o = acc[:, c:]
    res = x_ref[0, dilation : dilation + l_out, :].astype(jnp.float32)
    out = jax.nn.sigmoid(gate_o) * _leaky(conv_o) + res
    o_ref[0, :, :] = out.astype(o_ref.dtype)


def _convt_kernel(x_ref, w_ref, b_ref, o_ref, *, a_len):
    # Polyphase transposed conv (no zero-stuffing), LeakyReLU(0.2) fused.
    # x_ref: (1, A+3, Cin)   w_ref: (4, Cin, S*Cout) phase-packed   b_ref: (1, S*Cout)
    # o_ref: (1, A, S*Cout); output phase r, position a lives at lanes [r*Cout, (r+1)*Cout).
    sc = w_ref.shape[-1]
    acc = jnp.zeros((a_len, sc), jnp.float32)
    for t in range(4):  # tap block t reads x_padded[a + 3 - t]
        s = 3 - t
        acc = acc + jnp.dot(
            x_ref[0, s : s + a_len, :], w_ref[t], preferred_element_type=jnp.float32
        )
    acc = _leaky(acc + b_ref[...])
    o_ref[0, :, :] = acc.astype(o_ref.dtype)


def _post_conv_kernel(x_ref, w_ref, b_ref, o_ref, *, ksize, l_out):
    # Cout == 1: produce a lane-dense (1, L_out) row (NT matmul, contract over Cin), tanh fused.
    # x_ref: (1, Lp, Cin)   w_ref: (K, 1, Cin)   b_ref: (1, 1)   o_ref: (1, 1, Lout)
    acc = jnp.zeros((1, l_out), jnp.float32)
    for k in range(ksize):
        acc = acc + jax.lax.dot_general(
            w_ref[k],
            x_ref[0, k : k + l_out, :],
            dimension_numbers=(((1,), (1,)), ((), ())),
            preferred_element_type=jnp.float32,
        )
    acc = jnp.tanh(acc + b_ref[...])
    o_ref[0, :, :] = acc.astype(o_ref.dtype)


# ----------------------------------------------------------------------------- wrappers


def mel_minmax(mel_nlc):
    n, l, c = mel_nlc.shape
    flat = mel_nlc.reshape(n * l, c)
    mn, mx = pl.pallas_call(
        _minmax_kernel,
        out_shape=(
            jax.ShapeDtypeStruct((1, 1), jnp.float32),
            jax.ShapeDtypeStruct((1, 1), jnp.float32),
        ),
    )(flat)
    return mn[0, 0], mx[0, 0]


def conv1d_nlc(x, w, b, *, dilation=1, padding=0, act="none"):
    # x: (N, L, Cin)   w: (K, Cin, Cout)   b: (Cout,)
    n, l, c_in = x.shape
    k, _, c_out = w.shape
    xp = jnp.pad(x, ((0, 0), (padding, padding), (0, 0)))
    lp = l + 2 * padding
    l_out = lp - dilation * (k - 1)
    kern = functools.partial(
        _conv1d_kernel, dilation=dilation, ksize=k, l_out=l_out, act=act
    )
    return pl.pallas_call(
        kern,
        out_shape=jax.ShapeDtypeStruct((n, l_out, c_out), x.dtype),
        grid=(n,),
        in_specs=[
            pl.BlockSpec((1, lp, c_in), lambda i: (i, 0, 0)),
            pl.BlockSpec((k, c_in, c_out), lambda i: (0, 0, 0)),
            pl.BlockSpec((1, c_out), lambda i: (0, 0)),
        ],
        out_specs=pl.BlockSpec((1, l_out, c_out), lambda i: (i, 0, 0)),
        compiler_params=_cparams(),
    )(xp, w, b.reshape(1, c_out))


def conv_transpose1d_nlc(x, w_t, b, *, stride):
    # ConvTranspose1d(kernel=3*stride, stride, padding=stride//2) + LeakyReLU(0.2),
    # computed as a polyphase conv on the un-stuffed input.
    # x: (N, L, Cin)   w_t: PyTorch layout (Cin, Cout, K)   b: (Cout,)
    n, l, c_in = x.shape
    _, c_out, k = w_t.shape
    s = stride
    p = s // 2
    assert k == 3 * s
    l_out = (l - 1) * s - 2 * p + k
    a_len = -(-l_out // s)  # ceil(L_out / stride)

    # Output phase r at position a: y[a*s + r] = sum_j x[a + d_r - j] @ W[q_r + j*s]
    # with q_r = (r+p) % s, d_r = (r+p) // s.  Pack taps into rows t = 1 - d_r + j of a
    # (4, Cin, s, Cout) tensor (one row block stays zero per phase) -> single tap loop.
    wbig = jnp.zeros((4, c_in, s, c_out), w_t.dtype)
    for r in range(s):
        q = (r + p) % s
        d = (r + p) // s
        for j in range(3):
            wbig = wbig.at[1 - d + j, :, r, :].set(w_t[:, :, q + j * s])
    w_phase = wbig.reshape(4, c_in, s * c_out)
    b_tile = jnp.tile(b, s).reshape(1, s * c_out)

    back = a_len + 1 - l  # 2 for even strides, 3 for odd
    xp = jnp.pad(x, ((0, 0), (2, back), (0, 0)))  # length = a_len + 3

    kern = functools.partial(_convt_kernel, a_len=a_len)
    y = pl.pallas_call(
        kern,
        out_shape=jax.ShapeDtypeStruct((n, a_len, s * c_out), x.dtype),
        grid=(n,),
        in_specs=[
            pl.BlockSpec((1, a_len + 3, c_in), lambda i: (i, 0, 0)),
            pl.BlockSpec((4, c_in, s * c_out), lambda i: (0, 0, 0)),
            pl.BlockSpec((1, s * c_out), lambda i: (0, 0)),
        ],
        out_specs=pl.BlockSpec((1, a_len, s * c_out), lambda i: (i, 0, 0)),
        compiler_params=_cparams(),
    )(xp, w_phase, b_tile)
    # Interleave phases: (N, A, s*Cout) -> (N, A*s, Cout), trim to exact output length.
    return y.reshape(n, a_len * s, c_out)[:, :l_out, :]


def gated_residual(x, wc, bc, wg, bg, *, dilation):
    # x: (N, L, C); padding == dilation so output length == L (matches PyTorch).
    n, l, c = x.shape
    k = wc.shape[0]  # 3
    pad = dilation
    xp = jnp.pad(x, ((0, 0), (pad, pad), (0, 0)))
    lp = l + 2 * pad
    w_cat = jnp.concatenate([wc, wg], axis=2)       # (3, C, 2C): [conv | gate]
    b_cat = jnp.concatenate([bc, bg]).reshape(1, 2 * c)
    kern = functools.partial(_gated_res_kernel, dilation=dilation, l_out=l, c=c)
    return pl.pallas_call(
        kern,
        out_shape=jax.ShapeDtypeStruct((n, l, c), x.dtype),
        grid=(n,),
        in_specs=[
            pl.BlockSpec((1, lp, c), lambda i: (i, 0, 0)),
            pl.BlockSpec((k, c, 2 * c), lambda i: (0, 0, 0)),
            pl.BlockSpec((1, 2 * c), lambda i: (0, 0)),
        ],
        out_specs=pl.BlockSpec((1, l, c), lambda i: (i, 0, 0)),
        compiler_params=_cparams(),
    )(xp, w_cat, b_cat)


def post_conv1d_nlc(x, w, b, *, padding):
    # Final conv (Cout = 1) + tanh, lane-dense output (N, 1, L_out).
    n, l, c_in = x.shape
    k = w.shape[0]
    xp = jnp.pad(x, ((0, 0), (padding, padding), (0, 0)))
    lp = l + 2 * padding
    l_out = lp - (k - 1)
    w_row = jnp.transpose(w, (0, 2, 1))  # (K, Cin, 1) -> (K, 1, Cin)
    kern = functools.partial(_post_conv_kernel, ksize=k, l_out=l_out)
    return pl.pallas_call(
        kern,
        out_shape=jax.ShapeDtypeStruct((n, 1, l_out), x.dtype),
        grid=(n,),
        in_specs=[
            pl.BlockSpec((1, lp, c_in), lambda i: (i, 0, 0)),
            pl.BlockSpec((k, 1, c_in), lambda i: (0, 0, 0)),
            pl.BlockSpec((1, 1), lambda i: (0, 0)),
        ],
        out_specs=pl.BlockSpec((1, 1, l_out), lambda i: (i, 0, 0)),
        compiler_params=_cparams(),
    )(xp, w_row, b.reshape(1, 1))


# ----------------------------------------------------------------------------- model


def init_params(key, mel_channels, hidden_channels, upsample_rates,
                num_resblocks=3, res_dilations=(1, 3, 5)):
    keys = iter(jax.random.split(key, 256))

    def winit(shape, fan_in):
        return jax.random.normal(next(keys), shape, jnp.float32) / jnp.sqrt(
            jnp.float32(fan_in)
        )

    params = {}
    params["pre_w"] = winit((7, mel_channels, hidden_channels), mel_channels * 7)
    params["pre_b"] = winit((hidden_channels,), hidden_channels)

    ups = []
    ch = hidden_channels
    for rate in upsample_rates:
        k = rate * 3
        w_t = winit((ch, ch // 2, k), ch * k)  # PyTorch ConvTranspose1d weight (Cin, Cout, K)
        b = winit((ch // 2,), ch)
        ups.append((w_t, b))
        ch //= 2
    params["ups"] = ups

    res = []
    for _ in range(num_resblocks):
        pairs = []
        for _d in res_dilations:
            pairs.append((
                winit((3, ch, ch), ch * 3), winit((ch,), ch),   # conv w, b
                winit((3, ch, ch), ch * 3), winit((ch,), ch),   # gate w, b
            ))
        res.append(pairs)
    params["res"] = res

    params["post_w"] = winit((7, ch, 1), ch * 7)
    params["post_b"] = winit((1,), 1)
    return params


def generator_forward(params, mel_ncl, upsample_rates, res_dilations=(1, 3, 5)):
    # mel_ncl: (N, mel_channels, L)  — PyTorch input layout.
    mel = jnp.transpose(mel_ncl, (0, 2, 1))  # NCL -> NLC

    # mel_norm = (mel - mn) / clamp(mx - mn, 1e-5); since the pre-conv is linear, fold
    # this global affine normalization into the pre-conv weights/bias instead of
    # materializing a normalized copy of mel in HBM.
    mn, mx = mel_minmax(mel)
    inv = 1.0 / jnp.maximum(mx - mn, jnp.float32(1e-5))
    pre_w = params["pre_w"]
    w_eff = pre_w * inv
    b_eff = params["pre_b"] - (mn * inv) * jnp.sum(pre_w, axis=(0, 1))
    x = conv1d_nlc(mel, w_eff, b_eff, dilation=1, padding=3, act="leaky")

    for rate, (w_t, b) in zip(upsample_rates, params["ups"]):
        x = conv_transpose1d_nlc(x, w_t, b, stride=rate)

    for pairs in params["res"]:
        # The reference ResidualBlock loop overwrites `out`; only the last pair matters.
        wc, bc, wg, bg = pairs[-1]
        x = gated_residual(x, wc, bc, wg, bg, dilation=res_dilations[-1])

    return post_conv1d_nlc(x, params["post_w"], params["post_b"], padding=3)


# ----------------------------------------------------------------------------- main


if __name__ == "__main__":
    MEL_CHANNELS = 16
    HIDDEN = 32
    UPSAMPLE_RATES = (2, 2)
    N, L = 2, 8

    key = jax.random.PRNGKey(0)
    k_mel, k_par = jax.random.split(key)
    mel = jax.random.normal(k_mel, (N, MEL_CHANNELS, L), jnp.float32)
    params = init_params(k_par, MEL_CHANNELS, HIDDEN, UPSAMPLE_RATES)

    fwd = jax.jit(functools.partial(generator_forward, upsample_rates=UPSAMPLE_RATES))
    out = jax.block_until_ready(fwd(params, mel))

    # Expected output length from the ConvTranspose1d formula.
    l_cur = L
    for r in UPSAMPLE_RATES:
        l_cur = (l_cur - 1) * r - 2 * (r // 2) + 3 * r
    assert out.shape == (N, 1, l_cur), out.shape
    assert bool(jnp.all(jnp.isfinite(out)))
    assert bool(jnp.all(jnp.abs(out) <= 1.0))  # tanh output
    print("KERNEL_OK")
</pallas_src>

<mosaic_0001>
module attributes {stable_mosaic.version = 11 : i64} {
  func.func @_minmax_kernel(%arg0: memref<16x16xf32, #tpu.memory_space<vmem>>, %arg1: memref<1x1xf32, #tpu.memory_space<vmem>>, %arg2: memref<1x1xf32, #tpu.memory_space<vmem>>) attributes {dimension_semantics = [], scalar_prefetch = 0 : i64, scratch_operands = 0 : i64, tpu.core_type = #tpu.core_type<tc>} {
    %c0 = arith.constant 0 : index
    %c0_0 = arith.constant 0 : index
    %0 = vector.load %arg0[%c0, %c0_0] : memref<16x16xf32, #tpu.memory_space<vmem>>, vector<16x16xf32>
    %1 = vector.shape_cast %0 : vector<16x16xf32> to vector<1x16x16xf32>
    %cst = arith.constant dense<0x7F800000> : vector<1xf32>
    %2 = vector.multi_reduction <minimumf>, %1, %cst [1, 2] : vector<1x16x16xf32> to vector<1xf32>
    %3 = vector.shape_cast %2 : vector<1xf32> to vector<1x1x1xf32>
    %4 = vector.extract %3[0, 0, 0] : f32 from vector<1x1x1xf32>
    %5 = vector.broadcast %4 : f32 to vector<1x1xf32>
    %c0_1 = arith.constant 0 : index
    %c0_2 = arith.constant 0 : index
    %6 = vector.load %arg1[%c0_1, %c0_2] : memref<1x1xf32, #tpu.memory_space<vmem>>, vector<1x1xf32>
    tpu.vector_store %arg1[%c0_1, %c0_2], %5 {strides = array<i32>} : memref<1x1xf32, #tpu.memory_space<vmem>>, vector<1x1xf32>,
    %7 = vector.shape_cast %0 : vector<16x16xf32> to vector<1x16x16xf32>
    %cst_3 = arith.constant dense<0xFF800000> : vector<1xf32>
    %8 = vector.multi_reduction <maximumf>, %7, %cst_3 [1, 2] : vector<1x16x16xf32> to vector<1xf32>
    %9 = vector.shape_cast %8 : vector<1xf32> to vector<1x1x1xf32>
    %10 = vector.extract %9[0, 0, 0] : f32 from vector<1x1x1xf32>
    %11 = vector.broadcast %10 : f32 to vector<1x1xf32>
    %c0_4 = arith.constant 0 : index
    %c0_5 = arith.constant 0 : index
    %12 = vector.load %arg2[%c0_4, %c0_5] : memref<1x1xf32, #tpu.memory_space<vmem>>, vector<1x1xf32>
    tpu.vector_store %arg2[%c0_4, %c0_5], %11 {strides = array<i32>} : memref<1x1xf32, #tpu.memory_space<vmem>>, vector<1x1xf32>,
    return
  }
}

module attributes {stable_mosaic.version = 11 : i64} {
  func.func @_convt_kernel(%arg0: i32, %arg1: memref<1x12x32xf32, #tpu.memory_space<vmem>>, %arg2: memref<4x32x32xf32, #tpu.memory_space<vmem>>, %arg3: memref<1x32xf32, #tpu.memory_space<vmem>>, %arg4: memref<1x9x32xf32, #tpu.memory_space<vmem>>) attributes {dimension_semantics = [#tpu.dimension_semantics<parallel>], iteration_bounds = array<i64: 2>, scalar_prefetch = 0 : i64, scratch_operands = 0 : i64, tpu.core_type = #tpu.core_type<tc>, window_params = [{transform_indices = @transform_0, window_bounds = array<i64: 1, 12, 32>}, {pipeline_mode = #tpu.pipeline_mode<synchronous>, transform_indices = @transform_1, window_bounds = array<i64: 4, 32, 32>}, {pipeline_mode = #tpu.pipeline_mode<synchronous>, transform_indices = @transform_2, window_bounds = array<i64: 1, 32>}, {transform_indices = @transform_3, window_bounds = array<i64: 1, 9, 32>}]} {
    %cst = arith.constant 0.000000e+00 : f32
    %0 = vector.broadcast %cst : f32 to vector<9x32xf32>
    %c0 = arith.constant 0 : index
    %c3 = arith.constant 3 : index
    %c0_0 = arith.constant 0 : index
    %1 = vector.load %arg1[%c0, %c3, %c0_0] : memref<1x12x32xf32, #tpu.memory_space<vmem>>, vector<1x9x32xf32>
    %2 = vector.shape_cast %1 : vector<1x9x32xf32> to vector<9x32xf32>
    %c0_1 = arith.constant 0 : index
    %c0_2 = arith.constant 0 : index
    %c0_3 = arith.constant 0 : index
    %3 = vector.load %arg2[%c0_1, %c0_2, %c0_3] : memref<4x32x32xf32, #tpu.memory_space<vmem>>, vector<1x32x32xf32>
    %4 = vector.shape_cast %3 : vector<1x32x32xf32> to vector<32x32xf32>
    %cst_4 = arith.constant dense<0.000000e+00> : vector<9x32xf32>
    %5 = tpu.matmul %2, %4, %cst_4 {dimension_numbers = #tpu.dot_dimension_numbers<[1], [0], [0], [1], [0, 0, 1, 1], [], []>} : vector<9x32xf32>, vector<32x32xf32>, vector<9x32xf32> -> vector<9x32xf32>
    %6 = arith.addf %0, %5 : vector<9x32xf32>
    %c0_5 = arith.constant 0 : index
    %c2 = arith.constant 2 : index
    %c0_6 = arith.constant 0 : index
    %7 = vector.load %arg1[%c0_5, %c2, %c0_6] : memref<1x12x32xf32, #tpu.memory_space<vmem>>, vector<1x9x32xf32>
    %8 = vector.shape_cast %7 : vector<1x9x32xf32> to vector<9x32xf32>
    %c1 = arith.constant 1 : index
    %c0_7 = arith.constant 0 : index
    %c0_8 = arith.constant 0 : index
    %9 = vector.load %arg2[%c1, %c0_7, %c0_8] : memref<4x32x32xf32, #tpu.memory_space<vmem>>, vector<1x32x32xf32>
    %10 = vector.shape_cast %9 : vector<1x32x32xf32> to vector<32x32xf32>
    %cst_9 = arith.constant dense<0.000000e+00> : vector<9x32xf32>
    %11 = tpu.matmul %8, %10, %cst_9 {dimension_numbers = #tpu.dot_dimension_numbers<[1], [0], [0], [1], [0, 0, 1, 1], [], []>} : vector<9x32xf32>, vector<32x32xf32>, vector<9x32xf32> -> vector<9x32xf32>
    %12 = arith.addf %6, %11 : vector<9x32xf32>
    %c0_10 = arith.constant 0 : index
    %c1_11 = arith.constant 1 : index
    %c0_12 = arith.constant 0 : index
    %13 = vector.load %arg1[%c0_10, %c1_11, %c0_12] : memref<1x12x32xf32, #tpu.memory_space<vmem>>, vector<1x9x32xf32>
    %14 = vector.shape_cast %13 : vector<1x9x32xf32> to vector<9x32xf32>
    %c2_13 = arith.constant 2 : index
    %c0_14 = arith.constant 0 : index
    %c0_15 = arith.constant 0 : index
    %15 = vector.load %arg2[%c2_13, %c0_14, %c0_15] : memref<4x32x32xf32, #tpu.memory_space<vmem>>, vector<1x32x32xf32>
    %16 = vector.shape_cast %15 : vector<1x32x32xf32> to vector<32x32xf32>
    %cst_16 = arith.constant dense<0.000000e+00> : vector<9x32xf32>
    %17 = tpu.matmul %14, %16, %cst_16 {dimension_numbers = #tpu.dot_dimension_numbers<[1], [0], [0], [1], [0, 0, 1, 1], [], []>} : vector<9x32xf32>, vector<32x32xf32>, vector<9x32xf32> -> vector<9x32xf32>
    %18 = arith.addf %12, %17 : vector<9x32xf32>
    %c0_17 = arith.constant 0 : index
    %c0_18 = arith.constant 0 : index
    %c0_19 = arith.constant 0 : index
    %19 = vector.load %arg1[%c0_17, %c0_18, %c0_19] : memref<1x12x32xf32, #tpu.memory_space<vmem>>, vector<1x9x32xf32>
    %20 = vector.shape_cast %19 : vector<1x9x32xf32> to vector<9x32xf32>
    %c3_20 = arith.constant 3 : index
    %c0_21 = arith.constant 0 : index
    %c0_22 = arith.constant 0 : index
    %21 = vector.load %arg2[%c3_20, %c0_21, %c0_22] : memref<4x32x32xf32, #tpu.memory_space<vmem>>, vector<1x32x32xf32>
    %22 = vector.shape_cast %21 : vector<1x32x32xf32> to vector<32x32xf32>
    %cst_23 = arith.constant dense<0.000000e+00> : vector<9x32xf32>
    %23 = tpu.matmul %20, %22, %cst_23 {dimension_numbers = #tpu.dot_dimension_numbers<[1], [0], [0], [1], [0, 0, 1, 1], [], []>} : vector<9x32xf32>, vector<32x32xf32>, vector<9x32xf32> -> vector<9x32xf32>
    %24 = arith.addf %18, %23 : vector<9x32xf32>
    %c0_24 = arith.constant 0 : index
    %c0_25 = arith.constant 0 : index
    %25 = vector.load %arg3[%c0_24, %c0_25] : memref<1x32xf32, #tpu.memory_space<vmem>>, vector<1x32xf32>
    %26 = vector.broadcast %25 : vector<1x32xf32> to vector<9x32xf32>
    %27 = arith.addf %24, %26 : vector<9x32xf32>
    %cst_26 = arith.constant 0.000000e+00 : f32
    %28 = vector.broadcast %cst_26 : f32 to vector<9x32xf32>
    %29 = arith.cmpf oge, %27, %28 : vector<9x32xf32>
    %cst_27 = arith.constant 2.000000e-01 : f32
    %30 = vector.broadcast %cst_27 : f32 to vector<9x32xf32>
    %31 = arith.mulf %30, %27 : vector<9x32xf32>
    %32 = arith.select %29, %27, %31 : vector<9x32xi1>, vector<9x32xf32>
    %c0_28 = arith.constant 0 : index
    %c0_29 = arith.constant 0 : index
    %c0_30 = arith.constant 0 : index
    %33 = vector.load %arg4[%c0_28, %c0_29, %c0_30] : memref<1x9x32xf32, #tpu.memory_space<vmem>>, vector<1x9x32xf32>
    %34 = vector.shape_cast %33 : vector<1x9x32xf32> to vector<9x32xf32>
    %35 = vector.shape_cast %32 : vector<9x32xf32> to vector<1x9x32xf32>
    tpu.vector_store %arg4[%c0_28, %c0_29, %c0_30], %35 {strides = array<i32>} : memref<1x9x32xf32, #tpu.memory_space<vmem>>, vector<1x9x32xf32>,
    return
  }
  func.func @transform_0(%arg0: i32) -> (i32, i32, i32) {
    %c0_i32 = arith.constant 0 : i32
    %c0_i32_0 = arith.constant 0 : i32
    %c0_i32_1 = arith.constant 0 : i32
    return %arg0, %c0_i32, %c0_i32_0 : i32, i32, i32
  }
  func.func @transform_1(%arg0: i32) -> (i32, i32, i32) {
    %c0_i32 = arith.constant 0 : i32
    %c0_i32_0 = arith.constant 0 : i32
    %c0_i32_1 = arith.constant 0 : i32
    %c0_i32_2 = arith.constant 0 : i32
    return %c0_i32, %c0_i32_0, %c0_i32_1 : i32, i32, i32
  }
  func.func @transform_2(%arg0: i32) -> (i32, i32) {
    %c0_i32 = arith.constant 0 : i32
    %c0_i32_0 = arith.constant 0 : i32
    %c0_i32_1 = arith.constant 0 : i32
    return %c0_i32, %c0_i32_0 : i32, i32
  }
  func.func @transform_3(%arg0: i32) -> (i32, i32, i32) {
    %c0_i32 = arith.constant 0 : i32
    %c0_i32_0 = arith.constant 0 : i32
    %c0_i32_1 = arith.constant 0 : i32
    return %arg0, %c0_i32, %c0_i32_0 : i32, i32, i32
  }
}

module attributes {stable_mosaic.version = 11 : i64} {
  func.func @_conv1d_kernel(%arg0: i32, %arg1: memref<1x14x16xf32, #tpu.memory_space<vmem>>, %arg2: memref<7x16x32xf32, #tpu.memory_space<vmem>>, %arg3: memref<1x32xf32, #tpu.memory_space<vmem>>, %arg4: memref<1x8x32xf32, #tpu.memory_space<vmem>>) attributes {dimension_semantics = [#tpu.dimension_semantics<parallel>], iteration_bounds = array<i64: 2>, scalar_prefetch = 0 : i64, scratch_operands = 0 : i64, tpu.core_type = #tpu.core_type<tc>, window_params = [{transform_indices = @transform_0, window_bounds = array<i64: 1, 14, 16>}, {pipeline_mode = #tpu.pipeline_mode<synchronous>, transform_indices = @transform_1, window_bounds = array<i64: 7, 16, 32>}, {pipeline_mode = #tpu.pipeline_mode<synchronous>, transform_indices = @transform_2, window_bounds = array<i64: 1, 32>}, {transform_indices = @transform_3, window_bounds = array<i64: 1, 8, 32>}]} {
    %cst = arith.constant 0.000000e+00 : f32
    %0 = vector.broadcast %cst : f32 to vector<8x32xf32>
    %c0 = arith.constant 0 : index
    %c0_0 = arith.constant 0 : index
    %c0_1 = arith.constant 0 : index
    %1 = vector.load %arg1[%c0, %c0_0, %c0_1] : memref<1x14x16xf32, #tpu.memory_space<vmem>>, vector<1x8x16xf32>
    %2 = vector.shape_cast %1 : vector<1x8x16xf32> to vector<8x16xf32>
    %c0_2 = arith.constant 0 : index
    %c0_3 = arith.constant 0 : index
    %c0_4 = arith.constant 0 : index
    %3 = vector.load %arg2[%c0_2, %c0_3, %c0_4] : memref<7x16x32xf32, #tpu.memory_space<vmem>>, vector<1x16x32xf32>
    %4 = vector.shape_cast %3 : vector<1x16x32xf32> to vector<16x32xf32>
    %cst_5 = arith.constant dense<0.000000e+00> : vector<8x32xf32>
    %5 = tpu.matmul %2, %4, %cst_5 {dimension_numbers = #tpu.dot_dimension_numbers<[1], [0], [0], [1], [0, 0, 1, 1], [], []>} : vector<8x16xf32>, vector<16x32xf32>, vector<8x32xf32> -> vector<8x32xf32>
    %6 = arith.addf %0, %5 : vector<8x32xf32>
    %c0_6 = arith.constant 0 : index
    %c1 = arith.constant 1 : index
    %c0_7 = arith.constant 0 : index
    %7 = vector.load %arg1[%c0_6, %c1, %c0_7] : memref<1x14x16xf32, #tpu.memory_space<vmem>>, vector<1x8x16xf32>
    %8 = vector.shape_cast %7 : vector<1x8x16xf32> to vector<8x16xf32>
    %c1_8 = arith.constant 1 : index
    %c0_9 = arith.constant 0 : index
    %c0_10 = arith.constant 0 : index
    %9 = vector.load %arg2[%c1_8, %c0_9, %c0_10] : memref<7x16x32xf32, #tpu.memory_space<vmem>>, vector<1x16x32xf32>
    %10 = vector.shape_cast %9 : vector<1x16x32xf32> to vector<16x32xf32>
    %cst_11 = arith.constant dense<0.000000e+00> : vector<8x32xf32>
    %11 = tpu.matmul %8, %10, %cst_11 {dimension_numbers = #tpu.dot_dimension_numbers<[1], [0], [0], [1], [0, 0, 1, 1], [], []>} : vector<8x16xf32>, vector<16x32xf32>, vector<8x32xf32> -> vector<8x32xf32>
    %12 = arith.addf %6, %11 : vector<8x32xf32>
    %c0_12 = arith.constant 0 : index
    %c2 = arith.constant 2 : index
    %c0_13 = arith.constant 0 : index
    %13 = vector.load %arg1[%c0_12, %c2, %c0_13] : memref<1x14x16xf32, #tpu.memory_space<vmem>>, vector<1x8x16xf32>
    %14 = vector.shape_cast %13 : vector<1x8x16xf32> to vector<8x16xf32>
    %c2_14 = arith.constant 2 : index
    %c0_15 = arith.constant 0 : index
    %c0_16 = arith.constant 0 : index
    %15 = vector.load %arg2[%c2_14, %c0_15, %c0_16] : memref<7x16x32xf32, #tpu.memory_space<vmem>>, vector<1x16x32xf32>
    %16 = vector.shape_cast %15 : vector<1x16x32xf32> to vector<16x32xf32>
    %cst_17 = arith.constant dense<0.000000e+00> : vector<8x32xf32>
    %17 = tpu.matmul %14, %16, %cst_17 {dimension_numbers = #tpu.dot_dimension_numbers<[1], [0], [0], [1], [0, 0, 1, 1], [], []>} : vector<8x16xf32>, vector<16x32xf32>, vector<8x32xf32> -> vector<8x32xf32>
    %18 = arith.addf %12, %17 : vector<8x32xf32>
    %c0_18 = arith.constant 0 : index
    %c3 = arith.constant 3 : index
    %c0_19 = arith.constant 0 : index
    %19 = vector.load %arg1[%c0_18, %c3, %c0_19] : memref<1x14x16xf32, #tpu.memory_space<vmem>>, vector<1x8x16xf32>
    %20 = vector.shape_cast %19 : vector<1x8x16xf32> to vector<8x16xf32>
    %c3_20 = arith.constant 3 : index
    %c0_21 = arith.constant 0 : index
    %c0_22 = arith.constant 0 : index
    %21 = vector.load %arg2[%c3_20, %c0_21, %c0_22] : memref<7x16x32xf32, #tpu.memory_space<vmem>>, vector<1x16x32xf32>
    %22 = vector.shape_cast %21 : vector<1x16x32xf32> to vector<16x32xf32>
    %cst_23 = arith.constant dense<0.000000e+00> : vector<8x32xf32>
    %23 = tpu.matmul %20, %22, %cst_23 {dimension_numbers = #tpu.dot_dimension_numbers<[1], [0], [0], [1], [0, 0, 1, 1], [], []>} : vector<8x16xf32>, vector<16x32xf32>, vector<8x32xf32> -> vector<8x32xf32>
    %24 = arith.addf %18, %23 : vector<8x32xf32>
    %c0_24 = arith.constant 0 : index
    %c4 = arith.constant 4 : index
    %c0_25 = arith.constant 0 : index
    %25 = vector.load %arg1[%c0_24, %c4, %c0_25] : memref<1x14x16xf32, #tpu.memory_space<vmem>>, vector<1x8x16xf32>
    %26 = vector.shape_cast %25 : vector<1x8x16xf32> to vector<8x16xf32>
    %c4_26 = arith.constant 4 : index
    %c0_27 = arith.constant 0 : index
    %c0_28 = arith.constant 0 : index
    %27 = vector.load %arg2[%c4_26, %c0_27, %c0_28] : memref<7x16x32xf32, #tpu.memory_space<vmem>>, vector<1x16x32xf32>
    %28 = vector.shape_cast %27 : vector<1x16x32xf32> to vector<16x32xf32>
    %cst_29 = arith.constant dense<0.000000e+00> : vector<8x32xf32>
    %29 = tpu.matmul %26, %28, %cst_29 {dimension_numbers = #tpu.dot_dimension_numbers<[1], [0], [0], [1], [0, 0, 1, 1], [], []>} : vector<8x16xf32>, vector<16x32xf32>, vector<8x32xf32> -> vector<8x32xf32>
    %30 = arith.addf %24, %29 : vector<8x32xf32>
    %c0_30 = arith.constant 0 : index
    %c5 = arith.constant 5 : index
    %c0_31 = arith.constant 0 : index
    %31 = vector.load %arg1[%c0_30, %c5, %c0_31] : memref<1x14x16xf32, #tpu.memory_space<vmem>>, vector<1x8x16xf32>
    %32 = vector.shape_cast %31 : vector<1x8x16xf32> to vector<8x16xf32>
    %c5_32 = arith.constant 5 : index
    %c0_33 = arith.constant 0 : index
    %c0_34 = arith.constant 0 : index
    %33 = vector.load %arg2[%c5_32, %c0_33, %c0_34] : memref<7x16x32xf32, #tpu.memory_space<vmem>>, vector<1x16x32xf32>
    %34 = vector.shape_cast %33 : vector<1x16x32xf32> to vector<16x32xf32>
    %cst_35 = arith.constant dense<0.000000e+00> : vector<8x32xf32>
    %35 = tpu.matmul %32, %34, %cst_35 {dimension_numbers = #tpu.dot_dimension_numbers<[1], [0], [0], [1], [0, 0, 1, 1], [], []>} : vector<8x16xf32>, vector<16x32xf32>, vector<8x32xf32> -> vector<8x32xf32>
    %36 = arith.addf %30, %35 : vector<8x32xf32>
    %c0_36 = arith.constant 0 : index
    %c6 = arith.constant 6 : index
    %c0_37 = arith.constant 0 : index
    %37 = vector.load %arg1[%c0_36, %c6, %c0_37] : memref<1x14x16xf32, #tpu.memory_space<vmem>>, vector<1x8x16xf32>
    %38 = vector.shape_cast %37 : vector<1x8x16xf32> to vector<8x16xf32>
    %c6_38 = arith.constant 6 : index
    %c0_39 = arith.constant 0 : index
    %c0_40 = arith.constant 0 : index
    %39 = vector.load %arg2[%c6_38, %c0_39, %c0_40] : memref<7x16x32xf32, #tpu.memory_space<vmem>>, vector<1x16x32xf32>
    %40 = vector.shape_cast %39 : vector<1x16x32xf32> to vector<16x32xf32>
    %cst_41 = arith.constant dense<0.000000e+00> : vector<8x32xf32>
    %41 = tpu.matmul %38, %40, %cst_41 {dimension_numbers = #tpu.dot_dimension_numbers<[1], [0], [0], [1], [0, 0, 1, 1], [], []>} : vector<8x16xf32>, vector<16x32xf32>, vector<8x32xf32> -> vector<8x32xf32>
    %42 = arith.addf %36, %41 : vector<8x32xf32>
    %c0_42 = arith.constant 0 : index
    %c0_43 = arith.constant 0 : index
    %43 = vector.load %arg3[%c0_42, %c0_43] : memref<1x32xf32, #tpu.memory_space<vmem>>, vector<1x32xf32>
    %44 = vector.broadcast %43 : vector<1x32xf32> to vector<8x32xf32>
    %45 = arith.addf %42, %44 : vector<8x32xf32>
    %cst_44 = arith.constant 0.000000e+00 : f32
    %46 = vector.broadcast %cst_44 : f32 to vector<8x32xf32>
    %47 = arith.cmpf oge, %45, %46 : vector<8x32xf32>
    %cst_45 = arith.constant 2.000000e-01 : f32
    %48 = vector.broadcast %cst_45 : f32 to vector<8x32xf32>
    %49 = arith.mulf %48, %45 : vector<8x32xf32>
    %50 = arith.select %47, %45, %49 : vector<8x32xi1>, vector<8x32xf32>
    %c0_46 = arith.constant 0 : index
    %c0_47 = arith.constant 0 : index
    %c0_48 = arith.constant 0 : index
    %51 = vector.load %arg4[%c0_46, %c0_47, %c0_48] : memref<1x8x32xf32, #tpu.memory_space<vmem>>, vector<1x8x32xf32>
    %52 = vector.shape_cast %51 : vector<1x8x32xf32> to vector<8x32xf32>
    %53 = vector.shape_cast %50 : vector<8x32xf32> to vector<1x8x32xf32>
    tpu.vector_store %arg4[%c0_46, %c0_47, %c0_48], %53 {strides = array<i32>} : memref<1x8x32xf32, #tpu.memory_space<vmem>>, vector<1x8x32xf32>,
    return
  }
  func.func @transform_0(%arg0: i32) -> (i32, i32, i32) {
    %c0_i32 = arith.constant 0 : i32
    %c0_i32_0 = arith.constant 0 : i32
    %c0_i32_1 = arith.constant 0 : i32
    return %arg0, %c0_i32, %c0_i32_0 : i32, i32, i32
  }
  func.func @transform_1(%arg0: i32) -> (i32, i32, i32) {
    %c0_i32 = arith.constant 0 : i32
    %c0_i32_0 = arith.constant 0 : i32
    %c0_i32_1 = arith.constant 0 : i32
    %c0_i32_2 = arith.constant 0 : i32
    return %c0_i32, %c0_i32_0, %c0_i32_1 : i32, i32, i32
  }
  func.func @transform_2(%arg0: i32) -> (i32, i32) {
    %c0_i32 = arith.constant 0 : i32
    %c0_i32_0 = arith.constant 0 : i32
    %c0_i32_1 = arith.constant 0 : i32
    return %c0_i32, %c0_i32_0 : i32, i32
  }
  func.func @transform_3(%arg0: i32) -> (i32, i32, i32) {
    %c0_i32 = arith.constant 0 : i32
    %c0_i32_0 = arith.constant 0 : i32
    %c0_i32_1 = arith.constant 0 : i32
    return %arg0, %c0_i32, %c0_i32_0 : i32, i32, i32
  }
}

module attributes {stable_mosaic.version = 11 : i64} {
  func.func @_gated_res_kernel(%arg0: i32, %arg1: memref<1x48x8xf32, #tpu.memory_space<vmem>>, %arg2: memref<3x8x16xf32, #tpu.memory_space<vmem>>, %arg3: memref<1x16xf32, #tpu.memory_space<vmem>>, %arg4: memref<1x38x8xf32, #tpu.memory_space<vmem>>) attributes {dimension_semantics = [#tpu.dimension_semantics<parallel>], iteration_bounds = array<i64: 2>, scalar_prefetch = 0 : i64, scratch_operands = 0 : i64, tpu.core_type = #tpu.core_type<tc>, window_params = [{transform_indices = @transform_0, window_bounds = array<i64: 1, 48, 8>}, {pipeline_mode = #tpu.pipeline_mode<synchronous>, transform_indices = @transform_1, window_bounds = array<i64: 3, 8, 16>}, {pipeline_mode = #tpu.pipeline_mode<synchronous>, transform_indices = @transform_2, window_bounds = array<i64: 1, 16>}, {transform_indices = @transform_3, window_bounds = array<i64: 1, 38, 8>}]} {
    %cst = arith.constant 0.000000e+00 : f32
    %0 = vector.broadcast %cst : f32 to vector<38x16xf32>
    %c0 = arith.constant 0 : index
    %c0_0 = arith.constant 0 : index
    %c0_1 = arith.constant 0 : index
    %1 = vector.load %arg1[%c0, %c0_0, %c0_1] : memref<1x48x8xf32, #tpu.memory_space<vmem>>, vector<1x38x8xf32>
    %2 = vector.shape_cast %1 : vector<1x38x8xf32> to vector<38x8xf32>
    %c0_2 = arith.constant 0 : index
    %c0_3 = arith.constant 0 : index
    %c0_4 = arith.constant 0 : index
    %3 = vector.load %arg2[%c0_2, %c0_3, %c0_4] : memref<3x8x16xf32, #tpu.memory_space<vmem>>, vector<1x8x16xf32>
    %4 = vector.shape_cast %3 : vector<1x8x16xf32> to vector<8x16xf32>
    %cst_5 = arith.constant dense<0.000000e+00> : vector<38x16xf32>
    %5 = tpu.matmul %2, %4, %cst_5 {dimension_numbers = #tpu.dot_dimension_numbers<[1], [0], [0], [1], [0, 0, 1, 1], [], []>} : vector<38x8xf32>, vector<8x16xf32>, vector<38x16xf32> -> vector<38x16xf32>
    %6 = arith.addf %0, %5 : vector<38x16xf32>
    %c0_6 = arith.constant 0 : index
    %c5 = arith.constant 5 : index
    %c0_7 = arith.constant 0 : index
    %7 = vector.load %arg1[%c0_6, %c5, %c0_7] : memref<1x48x8xf32, #tpu.memory_space<vmem>>, vector<1x38x8xf32>
    %8 = vector.shape_cast %7 : vector<1x38x8xf32> to vector<38x8xf32>
    %c1 = arith.constant 1 : index
    %c0_8 = arith.constant 0 : index
    %c0_9 = arith.constant 0 : index
    %9 = vector.load %arg2[%c1, %c0_8, %c0_9] : memref<3x8x16xf32, #tpu.memory_space<vmem>>, vector<1x8x16xf32>
    %10 = vector.shape_cast %9 : vector<1x8x16xf32> to vector<8x16xf32>
    %cst_10 = arith.constant dense<0.000000e+00> : vector<38x16xf32>
    %11 = tpu.matmul %8, %10, %cst_10 {dimension_numbers = #tpu.dot_dimension_numbers<[1], [0], [0], [1], [0, 0, 1, 1], [], []>} : vector<38x8xf32>, vector<8x16xf32>, vector<38x16xf32> -> vector<38x16xf32>
    %12 = arith.addf %6, %11 : vector<38x16xf32>
    %c0_11 = arith.constant 0 : index
    %c10 = arith.constant 10 : index
    %c0_12 = arith.constant 0 : index
    %13 = vector.load %arg1[%c0_11, %c10, %c0_12] : memref<1x48x8xf32, #tpu.memory_space<vmem>>, vector<1x38x8xf32>
    %14 = vector.shape_cast %13 : vector<1x38x8xf32> to vector<38x8xf32>
    %c2 = arith.constant 2 : index
    %c0_13 = arith.constant 0 : index
    %c0_14 = arith.constant 0 : index
    %15 = vector.load %arg2[%c2, %c0_13, %c0_14] : memref<3x8x16xf32, #tpu.memory_space<vmem>>, vector<1x8x16xf32>
    %16 = vector.shape_cast %15 : vector<1x8x16xf32> to vector<8x16xf32>
    %cst_15 = arith.constant dense<0.000000e+00> : vector<38x16xf32>
    %17 = tpu.matmul %14, %16, %cst_15 {dimension_numbers = #tpu.dot_dimension_numbers<[1], [0], [0], [1], [0, 0, 1, 1], [], []>} : vector<38x8xf32>, vector<8x16xf32>, vector<38x16xf32> -> vector<38x16xf32>
    %18 = arith.addf %12, %17 : vector<38x16xf32>
    %c0_16 = arith.constant 0 : index
    %c0_17 = arith.constant 0 : index
    %19 = vector.load %arg3[%c0_16, %c0_17] : memref<1x16xf32, #tpu.memory_space<vmem>>, vector<1x16xf32>
    %20 = vector.broadcast %19 : vector<1x16xf32> to vector<38x16xf32>
    %21 = arith.addf %18, %20 : vector<38x16xf32>
    %22 = vector.extract_strided_slice %21 {offsets = [0, 0], sizes = [38, 8], strides = [1, 1]} : vector<38x16xf32> to vector<38x8xf32>
    %23 = vector.extract_strided_slice %21 {offsets = [0, 8], sizes = [38, 8], strides = [1, 1]} : vector<38x16xf32> to vector<38x8xf32>
    %c0_18 = arith.constant 0 : index
    %c5_19 = arith.constant 5 : index
    %c0_20 = arith.constant 0 : index
    %24 = vector.load %arg1[%c0_18, %c5_19, %c0_20] : memref<1x48x8xf32, #tpu.memory_space<vmem>>, vector<1x38x8xf32>
    %25 = vector.shape_cast %24 : vector<1x38x8xf32> to vector<38x8xf32>
    %26 = arith.negf %23 : vector<38x8xf32>
    %27 = math.exp %26 : vector<38x8xf32>
    %cst_21 = arith.constant 1.000000e+00 : f32
    %28 = vector.broadcast %cst_21 : f32 to vector<38x8xf32>
    %29 = arith.addf %28, %27 : vector<38x8xf32>
    %30 = arith.divf %28, %29 : vector<38x8xf32>
    %cst_22 = arith.constant 0.000000e+00 : f32
    %31 = vector.broadcast %cst_22 : f32 to vector<38x8xf32>
    %32 = arith.cmpf oge, %22, %31 : vector<38x8xf32>
    %cst_23 = arith.constant 2.000000e-01 : f32
    %33 = vector.broadcast %cst_23 : f32 to vector<38x8xf32>
    %34 = arith.mulf %33, %22 : vector<38x8xf32>
    %35 = arith.select %32, %22, %34 : vector<38x8xi1>, vector<38x8xf32>
    %36 = arith.mulf %30, %35 : vector<38x8xf32>
    %37 = arith.addf %36, %25 : vector<38x8xf32>
    %c0_24 = arith.constant 0 : index
    %c0_25 = arith.constant 0 : index
    %c0_26 = arith.constant 0 : index
    %38 = vector.load %arg4[%c0_24, %c0_25, %c0_26] : memref<1x38x8xf32, #tpu.memory_space<vmem>>, vector<1x38x8xf32>
    %39 = vector.shape_cast %38 : vector<1x38x8xf32> to vector<38x8xf32>
    %40 = vector.shape_cast %37 : vector<38x8xf32> to vector<1x38x8xf32>
    tpu.vector_store %arg4[%c0_24, %c0_25, %c0_26], %40 {strides = array<i32>} : memref<1x38x8xf32, #tpu.memory_space<vmem>>, vector<1x38x8xf32>,
    return
  }
  func.func @transform_0(%arg0: i32) -> (i32, i32, i32) {
    %c0_i32 = arith.constant 0 : i32
    %c0_i32_0 = arith.constant 0 : i32
    %c0_i32_1 = arith.constant 0 : i32
    return %arg0, %c0_i32, %c0_i32_0 : i32, i32, i32
  }
  func.func @transform_1(%arg0: i32) -> (i32, i32, i32) {
    %c0_i32 = arith.constant 0 : i32
    %c0_i32_0 = arith.constant 0 : i32
    %c0_i32_1 = arith.constant 0 : i32
    %c0_i32_2 = arith.constant 0 : i32
    return %c0_i32, %c0_i32_0, %c0_i32_1 : i32, i32, i32
  }
  func.func @transform_2(%arg0: i32) -> (i32, i32) {
    %c0_i32 = arith.constant 0 : i32
    %c0_i32_0 = arith.constant 0 : i32
    %c0_i32_1 = arith.constant 0 : i32
    return %c0_i32, %c0_i32_0 : i32, i32
  }
  func.func @transform_3(%arg0: i32) -> (i32, i32, i32) {
    %c0_i32 = arith.constant 0 : i32
    %c0_i32_0 = arith.constant 0 : i32
    %c0_i32_1 = arith.constant 0 : i32
    return %arg0, %c0_i32, %c0_i32_0 : i32, i32, i32
  }
}

module attributes {stable_mosaic.version = 11 : i64} {
  func.func @_post_conv_kernel(%arg0: i32, %arg1: memref<1x44x8xf32, #tpu.memory_space<vmem>>, %arg2: memref<7x1x8xf32, #tpu.memory_space<vmem>>, %arg3: memref<1x1xf32, #tpu.memory_space<vmem>>, %arg4: memref<1x1x38xf32, #tpu.memory_space<vmem>>) attributes {dimension_semantics = [#tpu.dimension_semantics<parallel>], iteration_bounds = array<i64: 2>, scalar_prefetch = 0 : i64, scratch_operands = 0 : i64, tpu.core_type = #tpu.core_type<tc>, window_params = [{transform_indices = @transform_0, window_bounds = array<i64: 1, 44, 8>}, {pipeline_mode = #tpu.pipeline_mode<synchronous>, transform_indices = @transform_1, window_bounds = array<i64: 7, 1, 8>}, {pipeline_mode = #tpu.pipeline_mode<synchronous>, transform_indices = @transform_2, window_bounds = array<i64: 1, 1>}, {transform_indices = @transform_3, window_bounds = array<i64: 1, 1, 38>}]} {
    %cst = arith.constant 0.000000e+00 : f32
    %0 = vector.broadcast %cst : f32 to vector<1x38xf32>
    %c0 = arith.constant 0 : index
    %c0_0 = arith.constant 0 : index
    %c0_1 = arith.constant 0 : index
    %1 = vector.load %arg2[%c0, %c0_0, %c0_1] : memref<7x1x8xf32, #tpu.memory_space<vmem>>, vector<1x1x8xf32>
    %2 = vector.shape_cast %1 : vector<1x1x8xf32> to vector<1x8xf32>
    %c0_2 = arith.constant 0 : index
    %c0_3 = arith.constant 0 : index
    %c0_4 = arith.constant 0 : index
    %3 = vector.load %arg1[%c0_2, %c0_3, %c0_4] : memref<1x44x8xf32, #tpu.memory_space<vmem>>, vector<1x38x8xf32>
    %4 = vector.shape_cast %3 : vector<1x38x8xf32> to vector<38x8xf32>
    %cst_5 = arith.constant dense<0.000000e+00> : vector<1x38xf32>
    %5 = tpu.matmul %2, %4, %cst_5 {dimension_numbers = #tpu.dot_dimension_numbers<[1], [1], [0], [0], [0, 0, 1, 0], [], []>} : vector<1x8xf32>, vector<38x8xf32>, vector<1x38xf32> -> vector<1x38xf32>
    %6 = arith.addf %0, %5 : vector<1x38xf32>
    %c1 = arith.constant 1 : index
    %c0_6 = arith.constant 0 : index
    %c0_7 = arith.constant 0 : index
    %7 = vector.load %arg2[%c1, %c0_6, %c0_7] : memref<7x1x8xf32, #tpu.memory_space<vmem>>, vector<1x1x8xf32>
    %8 = vector.shape_cast %7 : vector<1x1x8xf32> to vector<1x8xf32>
    %c0_8 = arith.constant 0 : index
    %c1_9 = arith.constant 1 : index
    %c0_10 = arith.constant 0 : index
    %9 = vector.load %arg1[%c0_8, %c1_9, %c0_10] : memref<1x44x8xf32, #tpu.memory_space<vmem>>, vector<1x38x8xf32>
    %10 = vector.shape_cast %9 : vector<1x38x8xf32> to vector<38x8xf32>
    %cst_11 = arith.constant dense<0.000000e+00> : vector<1x38xf32>
    %11 = tpu.matmul %8, %10, %cst_11 {dimension_numbers = #tpu.dot_dimension_numbers<[1], [1], [0], [0], [0, 0, 1, 0], [], []>} : vector<1x8xf32>, vector<38x8xf32>, vector<1x38xf32> -> vector<1x38xf32>
    %12 = arith.addf %6, %11 : vector<1x38xf32>
    %c2 = arith.constant 2 : index
    %c0_12 = arith.constant 0 : index
    %c0_13 = arith.constant 0 : index
    %13 = vector.load %arg2[%c2, %c0_12, %c0_13] : memref<7x1x8xf32, #tpu.memory_space<vmem>>, vector<1x1x8xf32>
    %14 = vector.shape_cast %13 : vector<1x1x8xf32> to vector<1x8xf32>
    %c0_14 = arith.constant 0 : index
    %c2_15 = arith.constant 2 : index
    %c0_16 = arith.constant 0 : index
    %15 = vector.load %arg1[%c0_14, %c2_15, %c0_16] : memref<1x44x8xf32, #tpu.memory_space<vmem>>, vector<1x38x8xf32>
    %16 = vector.shape_cast %15 : vector<1x38x8xf32> to vector<38x8xf32>
    %cst_17 = arith.constant dense<0.000000e+00> : vector<1x38xf32>
    %17 = tpu.matmul %14, %16, %cst_17 {dimension_numbers = #tpu.dot_dimension_numbers<[1], [1], [0], [0], [0, 0, 1, 0], [], []>} : vector<1x8xf32>, vector<38x8xf32>, vector<1x38xf32> -> vector<1x38xf32>
    %18 = arith.addf %12, %17 : vector<1x38xf32>
    %c3 = arith.constant 3 : index
    %c0_18 = arith.constant 0 : index
    %c0_19 = arith.constant 0 : index
    %19 = vector.load %arg2[%c3, %c0_18, %c0_19] : memref<7x1x8xf32, #tpu.memory_space<vmem>>, vector<1x1x8xf32>
    %20 = vector.shape_cast %19 : vector<1x1x8xf32> to vector<1x8xf32>
    %c0_20 = arith.constant 0 : index
    %c3_21 = arith.constant 3 : index
    %c0_22 = arith.constant 0 : index
    %21 = vector.load %arg1[%c0_20, %c3_21, %c0_22] : memref<1x44x8xf32, #tpu.memory_space<vmem>>, vector<1x38x8xf32>
    %22 = vector.shape_cast %21 : vector<1x38x8xf32> to vector<38x8xf32>
    %cst_23 = arith.constant dense<0.000000e+00> : vector<1x38xf32>
    %23 = tpu.matmul %20, %22, %cst_23 {dimension_numbers = #tpu.dot_dimension_numbers<[1], [1], [0], [0], [0, 0, 1, 0], [], []>} : vector<1x8xf32>, vector<38x8xf32>, vector<1x38xf32> -> vector<1x38xf32>
    %24 = arith.addf %18, %23 : vector<1x38xf32>
    %c4 = arith.constant 4 : index
    %c0_24 = arith.constant 0 : index
    %c0_25 = arith.constant 0 : index
    %25 = vector.load %arg2[%c4, %c0_24, %c0_25] : memref<7x1x8xf32, #tpu.memory_space<vmem>>, vector<1x1x8xf32>
    %26 = vector.shape_cast %25 : vector<1x1x8xf32> to vector<1x8xf32>
    %c0_26 = arith.constant 0 : index
    %c4_27 = arith.constant 4 : index
    %c0_28 = arith.constant 0 : index
    %27 = vector.load %arg1[%c0_26, %c4_27, %c0_28] : memref<1x44x8xf32, #tpu.memory_space<vmem>>, vector<1x38x8xf32>
    %28 = vector.shape_cast %27 : vector<1x38x8xf32> to vector<38x8xf32>
    %cst_29 = arith.constant dense<0.000000e+00> : vector<1x38xf32>
    %29 = tpu.matmul %26, %28, %cst_29 {dimension_numbers = #tpu.dot_dimension_numbers<[1], [1], [0], [0], [0, 0, 1, 0], [], []>} : vector<1x8xf32>, vector<38x8xf32>, vector<1x38xf32> -> vector<1x38xf32>
    %30 = arith.addf %24, %29 : vector<1x38xf32>
    %c5 = arith.constant 5 : index
    %c0_30 = arith.constant 0 : index
    %c0_31 = arith.constant 0 : index
    %31 = vector.load %arg2[%c5, %c0_30, %c0_31] : memref<7x1x8xf32, #tpu.memory_space<vmem>>, vector<1x1x8xf32>
    %32 = vector.shape_cast %31 : vector<1x1x8xf32> to vector<1x8xf32>
    %c0_32 = arith.constant 0 : index
    %c5_33 = arith.constant 5 : index
    %c0_34 = arith.constant 0 : index
    %33 = vector.load %arg1[%c0_32, %c5_33, %c0_34] : memref<1x44x8xf32, #tpu.memory_space<vmem>>, vector<1x38x8xf32>
    %34 = vector.shape_cast %33 : vector<1x38x8xf32> to vector<38x8xf32>
    %cst_35 = arith.constant dense<0.000000e+00> : vector<1x38xf32>
    %35 = tpu.matmul %32, %34, %cst_35 {dimension_numbers = #tpu.dot_dimension_numbers<[1], [1], [0], [0], [0, 0, 1, 0], [], []>} : vector<1x8xf32>, vector<38x8xf32>, vector<1x38xf32> -> vector<1x38xf32>
    %36 = arith.addf %30, %35 : vector<1x38xf32>
    %c6 = arith.constant 6 : index
    %c0_36 = arith.constant 0 : index
    %c0_37 = arith.constant 0 : index
    %37 = vector.load %arg2[%c6, %c0_36, %c0_37] : memref<7x1x8xf32, #tpu.memory_space<vmem>>, vector<1x1x8xf32>
    %38 = vector.shape_cast %37 : vector<1x1x8xf32> to vector<1x8xf32>
    %c0_38 = arith.constant 0 : index
    %c6_39 = arith.constant 6 : index
    %c0_40 = arith.constant 0 : index
    %39 = vector.load %arg1[%c0_38, %c6_39, %c0_40] : memref<1x44x8xf32, #tpu.memory_space<vmem>>, vector<1x38x8xf32>
    %40 = vector.shape_cast %39 : vector<1x38x8xf32> to vector<38x8xf32>
    %cst_41 = arith.constant dense<0.000000e+00> : vector<1x38xf32>
    %41 = tpu.matmul %38, %40, %cst_41 {dimension_numbers = #tpu.dot_dimension_numbers<[1], [1], [0], [0], [0, 0, 1, 0], [], []>} : vector<1x8xf32>, vector<38x8xf32>, vector<1x38xf32> -> vector<1x38xf32>
    %42 = arith.addf %36, %41 : vector<1x38xf32>
    %c0_42 = arith.constant 0 : index
    %c0_43 = arith.constant 0 : index
    %43 = vector.load %arg3[%c0_42, %c0_43] : memref<1x1xf32, #tpu.memory_space<vmem>>, vector<1x1xf32>
    %44 = vector.broadcast %43 : vector<1x1xf32> to vector<1x38xf32>
    %45 = arith.addf %42, %44 : vector<1x38xf32>
    %46 = math.tanh %45 : vector<1x38xf32>
    %c0_44 = arith.constant 0 : index
    %c0_45 = arith.constant 0 : index
    %c0_46 = arith.constant 0 : index
    %47 = vector.load %arg4[%c0_44, %c0_45, %c0_46] : memref<1x1x38xf32, #tpu.memory_space<vmem>>, vector<1x1x38xf32>
    %48 = vector.shape_cast %47 : vector<1x1x38xf32> to vector<1x38xf32>
    %49 = vector.shape_cast %46 : vector<1x38xf32> to vector<1x1x38xf32>
    tpu.vector_store %arg4[%c0_44, %c0_45, %c0_46], %49 {strides = array<i32>} : memref<1x1x38xf32, #tpu.memory_space<vmem>>, vector<1x1x38xf32>,
    return
  }
  func.func @transform_0(%arg0: i32) -> (i32, i32, i32) {
    %c0_i32 = arith.constant 0 : i32
    %c0_i32_0 = arith.constant 0 : i32
    %c0_i32_1 = arith.constant 0 : i32
    return %arg0, %c0_i32, %c0_i32_0 : i32, i32, i32
  }
  func.func @transform_1(%arg0: i32) -> (i32, i32, i32) {
    %c0_i32 = arith.constant 0 : i32
    %c0_i32_0 = arith.constant 0 : i32
    %c0_i32_1 = arith.constant 0 : i32
    %c0_i32_2 = arith.constant 0 : i32
    return %c0_i32, %c0_i32_0, %c0_i32_1 : i32, i32, i32
  }
  func.func @transform_2(%arg0: i32) -> (i32, i32) {
    %c0_i32 = arith.constant 0 : i32
    %c0_i32_0 = arith.constant 0 : i32
    %c0_i32_1 = arith.constant 0 : i32
    return %c0_i32, %c0_i32_0 : i32, i32
  }
  func.func @transform_3(%arg0: i32) -> (i32, i32, i32) {
    %c0_i32 = arith.constant 0 : i32
    %c0_i32_0 = arith.constant 0 : i32
    %c0_i32_1 = arith.constant 0 : i32
    return %arg0, %c0_i32, %c0_i32_0 : i32, i32, i32
  }
}

module attributes {stable_mosaic.version = 11 : i64} {
  func.func @_convt_kernel(%arg0: i32, %arg1: memref<1x22x16xf32, #tpu.memory_space<vmem>>, %arg2: memref<4x16x16xf32, #tpu.memory_space<vmem>>, %arg3: memref<1x16xf32, #tpu.memory_space<vmem>>, %arg4: memref<1x19x16xf32, #tpu.memory_space<vmem>>) attributes {dimension_semantics = [#tpu.dimension_semantics<parallel>], iteration_bounds = array<i64: 2>, scalar_prefetch = 0 : i64, scratch_operands = 0 : i64, tpu.core_type = #tpu.core_type<tc>, window_params = [{transform_indices = @transform_0, window_bounds = array<i64: 1, 22, 16>}, {pipeline_mode = #tpu.pipeline_mode<synchronous>, transform_indices = @transform_1, window_bounds = array<i64: 4, 16, 16>}, {pipeline_mode = #tpu.pipeline_mode<synchronous>, transform_indices = @transform_2, window_bounds = array<i64: 1, 16>}, {transform_indices = @transform_3, window_bounds = array<i64: 1, 19, 16>}]} {
    %cst = arith.constant 0.000000e+00 : f32
    %0 = vector.broadcast %cst : f32 to vector<19x16xf32>
    %c0 = arith.constant 0 : index
    %c3 = arith.constant 3 : index
    %c0_0 = arith.constant 0 : index
    %1 = vector.load %arg1[%c0, %c3, %c0_0] : memref<1x22x16xf32, #tpu.memory_space<vmem>>, vector<1x19x16xf32>
    %2 = vector.shape_cast %1 : vector<1x19x16xf32> to vector<19x16xf32>
    %c0_1 = arith.constant 0 : index
    %c0_2 = arith.constant 0 : index
    %c0_3 = arith.constant 0 : index
    %3 = vector.load %arg2[%c0_1, %c0_2, %c0_3] : memref<4x16x16xf32, #tpu.memory_space<vmem>>, vector<1x16x16xf32>
    %4 = vector.shape_cast %3 : vector<1x16x16xf32> to vector<16x16xf32>
    %cst_4 = arith.constant dense<0.000000e+00> : vector<19x16xf32>
    %5 = tpu.matmul %2, %4, %cst_4 {dimension_numbers = #tpu.dot_dimension_numbers<[1], [0], [0], [1], [0, 0, 1, 1], [], []>} : vector<19x16xf32>, vector<16x16xf32>, vector<19x16xf32> -> vector<19x16xf32>
    %6 = arith.addf %0, %5 : vector<19x16xf32>
    %c0_5 = arith.constant 0 : index
    %c2 = arith.constant 2 : index
    %c0_6 = arith.constant 0 : index
    %7 = vector.load %arg1[%c0_5, %c2, %c0_6] : memref<1x22x16xf32, #tpu.memory_space<vmem>>, vector<1x19x16xf32>
    %8 = vector.shape_cast %7 : vector<1x19x16xf32> to vector<19x16xf32>
    %c1 = arith.constant 1 : index
    %c0_7 = arith.constant 0 : index
    %c0_8 = arith.constant 0 : index
    %9 = vector.load %arg2[%c1, %c0_7, %c0_8] : memref<4x16x16xf32, #tpu.memory_space<vmem>>, vector<1x16x16xf32>
    %10 = vector.shape_cast %9 : vector<1x16x16xf32> to vector<16x16xf32>
    %cst_9 = arith.constant dense<0.000000e+00> : vector<19x16xf32>
    %11 = tpu.matmul %8, %10, %cst_9 {dimension_numbers = #tpu.dot_dimension_numbers<[1], [0], [0], [1], [0, 0, 1, 1], [], []>} : vector<19x16xf32>, vector<16x16xf32>, vector<19x16xf32> -> vector<19x16xf32>
    %12 = arith.addf %6, %11 : vector<19x16xf32>
    %c0_10 = arith.constant 0 : index
    %c1_11 = arith.constant 1 : index
    %c0_12 = arith.constant 0 : index
    %13 = vector.load %arg1[%c0_10, %c1_11, %c0_12] : memref<1x22x16xf32, #tpu.memory_space<vmem>>, vector<1x19x16xf32>
    %14 = vector.shape_cast %13 : vector<1x19x16xf32> to vector<19x16xf32>
    %c2_13 = arith.constant 2 : index
    %c0_14 = arith.constant 0 : index
    %c0_15 = arith.constant 0 : index
    %15 = vector.load %arg2[%c2_13, %c0_14, %c0_15] : memref<4x16x16xf32, #tpu.memory_space<vmem>>, vector<1x16x16xf32>
    %16 = vector.shape_cast %15 : vector<1x16x16xf32> to vector<16x16xf32>
    %cst_16 = arith.constant dense<0.000000e+00> : vector<19x16xf32>
    %17 = tpu.matmul %14, %16, %cst_16 {dimension_numbers = #tpu.dot_dimension_numbers<[1], [0], [0], [1], [0, 0, 1, 1], [], []>} : vector<19x16xf32>, vector<16x16xf32>, vector<19x16xf32> -> vector<19x16xf32>
    %18 = arith.addf %12, %17 : vector<19x16xf32>
    %c0_17 = arith.constant 0 : index
    %c0_18 = arith.constant 0 : index
    %c0_19 = arith.constant 0 : index
    %19 = vector.load %arg1[%c0_17, %c0_18, %c0_19] : memref<1x22x16xf32, #tpu.memory_space<vmem>>, vector<1x19x16xf32>
    %20 = vector.shape_cast %19 : vector<1x19x16xf32> to vector<19x16xf32>
    %c3_20 = arith.constant 3 : index
    %c0_21 = arith.constant 0 : index
    %c0_22 = arith.constant 0 : index
    %21 = vector.load %arg2[%c3_20, %c0_21, %c0_22] : memref<4x16x16xf32, #tpu.memory_space<vmem>>, vector<1x16x16xf32>
    %22 = vector.shape_cast %21 : vector<1x16x16xf32> to vector<16x16xf32>
    %cst_23 = arith.constant dense<0.000000e+00> : vector<19x16xf32>
    %23 = tpu.matmul %20, %22, %cst_23 {dimension_numbers = #tpu.dot_dimension_numbers<[1], [0], [0], [1], [0, 0, 1, 1], [], []>} : vector<19x16xf32>, vector<16x16xf32>, vector<19x16xf32> -> vector<19x16xf32>
    %24 = arith.addf %18, %23 : vector<19x16xf32>
    %c0_24 = arith.constant 0 : index
    %c0_25 = arith.constant 0 : index
    %25 = vector.load %arg3[%c0_24, %c0_25] : memref<1x16xf32, #tpu.memory_space<vmem>>, vector<1x16xf32>
    %26 = vector.broadcast %25 : vector<1x16xf32> to vector<19x16xf32>
    %27 = arith.addf %24, %26 : vector<19x16xf32>
    %cst_26 = arith.constant 0.000000e+00 : f32
    %28 = vector.broadcast %cst_26 : f32 to vector<19x16xf32>
    %29 = arith.cmpf oge, %27, %28 : vector<19x16xf32>
    %cst_27 = arith.constant 2.000000e-01 : f32
    %30 = vector.broadcast %cst_27 : f32 to vector<19x16xf32>
    %31 = arith.mulf %30, %27 : vector<19x16xf32>
    %32 = arith.select %29, %27, %31 : vector<19x16xi1>, vector<19x16xf32>
    %c0_28 = arith.constant 0 : index
    %c0_29 = arith.constant 0 : index
    %c0_30 = arith.constant 0 : index
    %33 = vector.load %arg4[%c0_28, %c0_29, %c0_30] : memref<1x19x16xf32, #tpu.memory_space<vmem>>, vector<1x19x16xf32>
    %34 = vector.shape_cast %33 : vector<1x19x16xf32> to vector<19x16xf32>
    %35 = vector.shape_cast %32 : vector<19x16xf32> to vector<1x19x16xf32>
    tpu.vector_store %arg4[%c0_28, %c0_29, %c0_30], %35 {strides = array<i32>} : memref<1x19x16xf32, #tpu.memory_space<vmem>>, vector<1x19x16xf32>,
    return
  }
  func.func @transform_0(%arg0: i32) -> (i32, i32, i32) {
    %c0_i32 = arith.constant 0 : i32
    %c0_i32_0 = arith.constant 0 : i32
    %c0_i32_1 = arith.constant 0 : i32
    return %arg0, %c0_i32, %c0_i32_0 : i32, i32, i32
  }
  func.func @transform_1(%arg0: i32) -> (i32, i32, i32) {
    %c0_i32 = arith.constant 0 : i32
    %c0_i32_0 = arith.constant 0 : i32
    %c0_i32_1 = arith.constant 0 : i32
    %c0_i32_2 = arith.constant 0 : i32
    return %c0_i32, %c0_i32_0, %c0_i32_1 : i32, i32, i32
  }
  func.func @transform_2(%arg0: i32) -> (i32, i32) {
    %c0_i32 = arith.constant 0 : i32
    %c0_i32_0 = arith.constant 0 : i32
    %c0_i32_1 = arith.constant 0 : i32
    return %c0_i32, %c0_i32_0 : i32, i32
  }
  func.func @transform_3(%arg0: i32) -> (i32, i32, i32) {
    %c0_i32 = arith.constant 0 : i32
    %c0_i32_0 = arith.constant 0 : i32
    %c0_i32_1 = arith.constant 0 : i32
    return %arg0, %c0_i32, %c0_i32_0 : i32, i32, i32
  }
}

</mosaic_0001>

<bundles_post_ra>
// kernel: tile.13
= control target key start
LH: loop header
LB: loop body
LE: loop exit
PB: predicated region body
PF: predicated region fallthrough
CT: control target
= control target key end

     0   :  { %s22_s0 = inlined_call_operand.vmem [shape: f32[16], index: 0, kind: input, shape index: {}]   ;;  %s23_s1 = inlined_call_operand.vmem [shape: f32[2,16], index: 1, kind: output, shape index: {}]  }
   0x1   :  { %v4_v0 = vld [vmem:[%s22_s0] ss:$0 sm:$0xff] }
   0x2   :  { %5 = vst [vmem:[%s23_s1] sm:$0x3] %v4_v0 }

// kernel: tile.14
= control target key start
LH: loop header
LB: loop body
LE: loop exit
PB: predicated region body
PF: predicated region fallthrough
CT: control target
= control target key end

     0   :  { %vm7_vm0 = vcmask 130048   ;;  %vm13_vm1 = vcmask 261248   ;;  %s39_s0 = inlined_call_operand.vmem [shape: f32[2,16], index: 0, kind: input, shape index: {}]   ;;  %s40_s1 = inlined_call_operand.vmem [shape: f32[1,32], index: 1, kind: output, shape index: {}]  }
   0x1   :  { %v4_v0 = vld [vmem:[%s39_s0] sm:$0x3]  ;;  %s22_s0 = smov 16  }
   0x2   :  { %5 = vst [vmem:[#allocation1] sm:$0x3] %v4_v0 }
   0x9   :  { %v10_v1 = vld [vmem:[#allocation1 + $0x1] sm:$0x1]   ;;  %v6_v2 = vld [vmem:[#allocation1] sm:$0x1]  }
   0xa   :  { %11 = vrot.lane.b32.xlu0 %v10_v1, %s22_s0  ;;  %8 = vst.msk [vmem:[#allocation0] sm:$0x1] %vm7_vm0, %v6_v2  }
  0x7c   :  { %v12_v3 = vpop.permute.xlu0 %11  }
  0x7d   :  { %14 = vst.msk [vmem:[#allocation0] sm:$0x1] %vm13_vm1, %v12_v3  }
  0x84   :  { %v18_v4 = vld [vmem:[#allocation0] sm:$0x1] }
  0x85   :  { %20 = vst [vmem:[%s40_s1] sm:$0x1] %v18_v4 }

// kernel: tile.18
= control target key start
LH: loop header
LB: loop body
LE: loop exit
PB: predicated region body
PF: predicated region fallthrough
CT: control target
= control target key end

     0   :  { %s22_s0 = inlined_call_operand.vmem [shape: f32[8], index: 0, kind: input, shape index: {}]   ;;  %s23_s1 = inlined_call_operand.vmem [shape: f32[2,8], index: 1, kind: output, shape index: {}]  }
   0x1   :  { %v4_v0 = vld [vmem:[%s22_s0] ss:$0 sm:$0xff] }
   0x2   :  { %5 = vst [vmem:[%s23_s1] sm:$0x3] %v4_v0 }

// kernel: generator_forward.8
= control target key start
LH: loop header
LB: loop body
LE: loop exit
PB: predicated region body
PF: predicated region fallthrough
CT: control target
= control target key end

     0   :  { %8 = vsyncpa [#allocation3], 0  ;;  %s226_s0 = inlined_call_operand.hbm [shape: f32[16,16], index: 0, kind: input, shape index: {}]   ;;  %s227_s1 = inlined_call_operand.hbm [shape: f32[1,1], index: 1, kind: output, shape index: {0}]   ;;  %s228_s2 = inlined_call_operand.hbm [shape: f32[1,1], index: 2, kind: output, shape index: {1}]  }
   0x1   :  { %9 = vsyncpa [#allocation4], 0 }
   0x2   :  { %10 = vsyncpa [#allocation7], 0  ;;  %s168_s9 = smov [#allocation2]   ;;  %s96_s13 = scalar_lea.hbm %s226_s0, 256 }
   0x3   :  { %s16_s10 = sshll.u32 %s168_s9, 4  ;;  %p97_p0 = scmp.ne.s32.totalorder %s226_s0, %s96_s13  ;;  %s17_s10 = int_to_ptr.vmem [resolvable:$true] %s16_s10 }
   0x4   :  { %p100_p1 = scmp.lt.u32.totalorder %s96_s13, %s226_s0 }
   0x6   :  { %p102_p2 = pnand %p100_p1, %p97_p0 }
   0x8   :  { %105 = shalt.err (!%p102_p2)
}
   0x9   :  { %s106_s18 = scalar_lea.vmem %s17_s10, 256  ;;  %p111_p4 = scmp.lt.s32.totalorder %s17_s10, %s17_s10 }
   0xa   :  { %p107_p3 = scmp.ne.s32.totalorder %s17_s10, %s106_s18  ;;  %p112_p5 = scmp.lt.s32.totalorder %s106_s18, %s106_s18 }
   0xc   :  { %p113_p6 = por %p112_p5, %p111_p4 }
   0xe   :  { %p114_p7 = pnand %p113_p6, %p107_p3 }
  0x10   :  { %117 = shalt.err (!%p114_p7)
}
  0x11   :  { %s169_s19 = smov 128   ;;  %s170_s20 = smov 8  }
  0x12   :  { %22 = dma.hbm_to_vmem [thread:$0]  %s226_s0, 256, %s17_s10, [#allocation3], %s169_s19, %s169_s19, %s170_s20  }
  0x13   :  { %162 = dma.done.wait [#allocation3], 256  }
  0x14   :  { %163 = vsyncadd [#allocation3], 4294967040  ;;  %vm28_vm0 = vcmask 130048   ;;  %v26_v0 = vld [vmem:[#allocation2] sm:$0xff]  ;;  %v27_v1 = vld [vmem:[#allocation2 + $0x8] sm:$0xff]  ;;  %s171_s0 = smov [#allocation5]  }
  0x15   :  { %v29_v2 = vsel %vm28_vm0, %v26_v0, inf  ;;  %v30_v3 = vsel %vm28_vm0, %v27_v1, inf  ;;  %v44_v4 = vsel %vm28_vm0, %v26_v0, -inf  ;;  %v45_v5 = vsel %vm28_vm0, %v27_v1, -inf  ;;  %s64_s23 = sshll.u32 %s171_s0, 4  ;;  %s172_s25 = smov [#allocation6]   ;;  %s65_s23 = int_to_ptr.vmem [resolvable:$true] %s64_s23 }
  0x16   :  { %v31_v6 = vmin.f32 %v29_v2, %v30_v3  ;;  %v46_v7 = vmax.f32 %v44_v4, %v45_v5  ;;  %vm42_vm1 = vcmask 0   ;;  %s74_s26 = sshll.u32 %s172_s25, 4  ;;  %s118_s27 = scalar_lea.vmem %s65_s23, 16  ;;  %s75_s26 = int_to_ptr.vmem [resolvable:$true] %s74_s26 }
  0x17   :  { %p119_p8 = scmp.ne.s32.totalorder %s65_s23, %s118_s27  ;;  %s122_s28 = scalar_lea.vmem %s65_s23, 32 }
  0x18   :  { %32 = vmin.xlane.f32.xlu0 %v31_v6  ;;  %p123_p9 = scmp.lt.s32.totalorder %s65_s23, %s65_s23  ;;  %p124_p10 = scmp.lt.s32.totalorder %s122_s28, %s118_s27 }
  0x1a   :  { %p125_p11 = por %p124_p10, %p123_p9 }
  0x1c   :  { %47 = vmax.xlane.f32.xlu0 %v46_v7  ;;  %p126_p12 = pnand %p125_p11, %p119_p8 }
  0xa5   :  { %v33_v8 = vpop.xlane.xlu0 %32 }
  0xa6   :  { %v34_v9 = vrot.slane %v33_v8, 4 }
  0xa8   :  { %v35_v10 = vmin.f32 %v33_v8, %v34_v9 }
  0xa9   :  { %v48_v11 = vpop.xlane.xlu0 %47 }
  0xaa   :  { %v36_v12 = vrot.slane %v35_v10, 2  ;;  %v49_v13 = vrot.slane %v48_v11, 4 }
  0xac   :  { %v50_v14 = vmax.f32 %v48_v11, %v49_v13  ;;  %v37_v15 = vmin.f32 %v35_v10, %v36_v12 }
  0xae   :  { %v51_v16 = vrot.slane %v50_v14, 2  ;;  %v38_v17 = vrot.slane %v37_v15, 1 }
  0xb0   :  { %v52_v18 = vmax.f32 %v50_v14, %v51_v16  ;;  %v39_v19 = vmin.f32 %v37_v15, %v38_v17 }
  0xb2   :  { %87 = vpush %v39_v19  ;;  %v53_v20 = vrot.slane %v52_v18, 1 }
  0xb4   :  { %v54_v21 = vmax.f32 %v52_v18, %v53_v20 }
  0xb6   :  { %89 = vpush %v54_v21 }
  0xe3   :  { %s88_s24 = spop %87 }
  0xe4   :  { %v41_v22 = vstv %s88_s24 }
  0xe5   :  { %43 = vst.msk [vmem:[#allocation5] sm:$0x1] %vm42_vm1, %v41_v22 }
  0xe6   :  { %129 = shalt.err (!%p126_p12)
}
  0xe7   :  { %s130_s3 = scalar_lea.hbm %s227_s1, 16 }
  0xe8   :  { %p131_p13 = scmp.ne.s32.totalorder %s227_s1, %s130_s3  ;;  %p134_p0 = scmp.lt.u32.totalorder %s130_s3, %s227_s1 }
  0xea   :  { %p136_p1 = pnand %p134_p0, %p131_p13 }
  0xec   :  { %139 = shalt.err (!%p136_p1)
}
  0xed   :  { %67 = dma.vmem_to_hbm [thread:$0]  %s65_s23, 16, %s227_s1, [#allocation4]  }
  0xee   :  { %s90_s10 = spop %89  ;;  %s140_s11 = scalar_lea.vmem %s75_s26, 16 }
  0xef   :  { %v56_v23 = vstv %s90_s10  ;;  %p141_p2 = scmp.ne.s32.totalorder %s75_s26, %s140_s11  ;;  %s144_s12 = scalar_lea.vmem %s75_s26, 32 }
  0xf0   :  { %57 = vst.msk [vmem:[#allocation6] sm:$0x1] %vm42_vm1, %v56_v23  ;;  %p145_p3 = scmp.lt.s32.totalorder %s75_s26, %s75_s26  ;;  %p146_p4 = scmp.lt.s32.totalorder %s144_s12, %s140_s11 }
  0xf2   :  { %p147_p5 = por %p146_p4, %p145_p3 }
  0xf4   :  { %p148_p6 = pnand %p147_p5, %p141_p2 }
  0xf6   :  { %151 = shalt.err (!%p148_p6)
}
  0xf7   :  { %s152_s15 = scalar_lea.hbm %s228_s2, 16 }
  0xf8   :  { %p153_p7 = scmp.ne.s32.totalorder %s228_s2, %s152_s15  ;;  %p156_p8 = scmp.lt.u32.totalorder %s152_s15, %s228_s2 }
  0xfa   :  { %p158_p9 = pnand %p156_p8, %p153_p7 }
  0xfc   :  { %161 = shalt.err (!%p158_p9)
}
  0xfd   :  { %77 = dma.vmem_to_hbm [thread:$0]  %s75_s26, 16, %s228_s2, [#allocation7]  }
  0xfe   :  { %164 = dma.done.wait [#allocation4], 16  }
  0xff   :  { %165 = vsyncadd [#allocation4], 4294967280 }
 0x100   :  { %166 = dma.done.wait [#allocation7], 16  }
 0x101   :  { %167 = vsyncadd [#allocation7], 4294967280 }
 0x102   :  { %84 = vsyncpa [#allocation3], 1 }
 0x103   :  { %85 = vsyncpa [#allocation4], 1 }
 0x104   :  { %86 = vsyncpa [#allocation7], 1 }

// kernel: tile.19
= control target key start
LH: loop header
LB: loop body
LE: loop exit
PB: predicated region body
PF: predicated region fallthrough
CT: control target
= control target key end

     0   :  { %vm7_vm0 = vcmask 64512   ;;  %vm13_vm1 = vcmask 130112   ;;  %s39_s0 = inlined_call_operand.vmem [shape: f32[2,8], index: 0, kind: input, shape index: {}]   ;;  %s40_s1 = inlined_call_operand.vmem [shape: f32[1,16], index: 1, kind: output, shape index: {}]  }
   0x1   :  { %v4_v0 = vld [vmem:[%s39_s0] sm:$0x3]  ;;  %s22_s0 = smov 8  }
   0x2   :  { %5 = vst [vmem:[#allocation1] sm:$0x3] %v4_v0 }
   0x9   :  { %v10_v1 = vld [vmem:[#allocation1 + $0x1] sm:$0x1]   ;;  %v6_v2 = vld [vmem:[#allocation1] sm:$0x1]  }
   0xa   :  { %11 = vrot.lane.b32.xlu0 %v10_v1, %s22_s0  ;;  %8 = vst.msk [vmem:[#allocation0] sm:$0x1] %vm7_vm0, %v6_v2  }
  0x7c   :  { %v12_v3 = vpop.permute.xlu0 %11  }
  0x7d   :  { %14 = vst.msk [vmem:[#allocation0] sm:$0x1] %vm13_vm1, %v12_v3  }
  0x84   :  { %v18_v4 = vld [vmem:[#allocation0] sm:$0x1] }
  0x85   :  { %20 = vst [vmem:[%s40_s1] sm:$0x1] %v18_v4 }

// kernel: generator_forward.10
= control target key start
LH: loop header
LB: loop body
LE: loop exit
PB: predicated region body
PF: predicated region fallthrough
CT: control target
= control target key end

     0   :  { %s776_s12 = smov 0   ;;  %s870_s0 = inlined_call_operand.vmem [shape: f32[2,12,32], index: 0, kind: input, shape index: {}]   ;;  %s871_s1 = inlined_call_operand.vmem [shape: f32[4,32,32], index: 1, kind: input, shape index: {}]   ;;  %s872_s2 = inlined_call_operand.vmem [shape: f32[1,32], index: 2, kind: input, shape index: {}]   ;;  %s873_s3 = inlined_call_operand.vmem [shape: f32[2,9,32], index: 3, kind: output, shape index: {}]  }
   0x1 LB: > { %s600_s13 = sadd.s32 4294967295, %s754_s12   ;;  %p604_p0 = scmp.ge.s32.totalorder %s754_s12, 1  ;;  %s754_s12 = sphi %s776_s12, %s13_s12  }
   0x2   : > { %p137_p1 = scmp.lt.s32.totalorder %s754_s12, 3 }
   0x4   : > { %p138_p2 = pnand %p604_p0, %p137_p1 }
   0x5   : > { %v609_v0 = vld [vmem:[%s871_s1 + $0x20] sm:$0xff] (!%p138_p2)  ;;  %v610_v1 = vld [vmem:[%s871_s1 + $0x28] sm:$0xff] (!%p138_p2)  ;;  %p161_p3 = scmp.lt.s32.totalorder (!%p138_p2), %s600_s13, 1  ;;  %v611_v5 = vld [vmem:[%s871_s1 + $0x30] sm:$0xff] (!%p138_p2)  ;;  %vm184_vm0 = vcmask (!%p138_p2), 261120   ;;  %vm543_vm2 = vcmask (!%p138_p2), 253952  }
   0x6   : > { %141 = sbr.rel (%p138_p2) target bundleno = 248 (0xf8), region = 32  ;;  %v617_v2 = vld [vmem:[%s871_s1 + $0x40] sm:$0xff] (!%p138_p2)  ;;  %v702_v3 = vpack.c.bf16 (!%p138_p2), %v610_v1, %v609_v0  ;;  %v618_v4 = vld [vmem:[%s871_s1 + $0x48] sm:$0xff] (!%p138_p2)  ;;  %v612_v6 = vld [vmem:[%s871_s1 + $0x38] sm:$0xff] (!%p138_p2) }
   0x7   : > { %v718_v7 = vpack.c.bf16 (!%p138_p2), %v618_v4, %v617_v2  ;;  %v706_v8 = vpack.c.bf16 (!%p138_p2), %v612_v6, %v611_v5  ;;  %v619_v9 = vld [vmem:[%s871_s1 + $0x50] sm:$0xff] (!%p138_p2)  ;;  %v620_v10 = vld [vmem:[%s871_s1 + $0x58] sm:$0xff] (!%p138_p2)  ;;  %v173_v11 = vld [vmem:[%s871_s1] sm:$0xff] (!%p138_p2) }
   0x8   : > { %703 = vmatprep.subr.bf16.mxu1 (!%p138_p2), %v702_v3  ;;  %v722_v12 = vpack.c.bf16 (!%p138_p2), %v620_v10, %v619_v9  ;;  %v174_v13 = vld [vmem:[%s871_s1 + $0x8] sm:$0xff] (!%p138_p2)  ;;  %v623_v14 = vld [vmem:[%s871_s1 + $0x60] sm:$0xff] (!%p138_p2)  ;;  %v175_v17 = vld [vmem:[%s871_s1 + $0x10] sm:$0xff] (!%p138_p2) }
   0x9   : > { %v624_v15 = vld [vmem:[%s871_s1 + $0x68] sm:$0xff] (!%p138_p2)  ;;  %719 = vmatprep.subr.bf16.mxu0 (!%p138_p2), %v718_v7  ;;  %705 = vmatpush3.bf16.msra.mxu1 (!%p138_p2), %v702_v3  ;;  %v710_v16 = vpack.c.bf16 (!%p138_p2), %v174_v13, %v173_v11  ;;  %v176_v21 = vld [vmem:[%s871_s1 + $0x18] sm:$0xff] (!%p138_p2)  ;;  %v625_v22 = vld [vmem:[%s871_s1 + $0x70] sm:$0xff] (!%p138_p2) }
   0xa   : > { %721 = vmatpush3.bf16.msra.mxu0 (!%p138_p2), %v718_v7  ;;  %707 = vmatprep.subr.bf16.mxu1 (!%p138_p2), %v706_v8  ;;  %v726_v20 = vpack.c.bf16 (!%p138_p2), %v624_v15, %v623_v14  ;;  %v626_v23 = vld [vmem:[%s871_s1 + $0x78] sm:$0xff] (!%p138_p2)  ;;  %v714_v26 = vpack.c.bf16 (!%p138_p2), %v176_v21, %v175_v17  ;;  %v629_v34 = vld [vmem:[%s872_s2] ss:$0 sm:$0xff] (!%p138_p2) }
   0xb   : > { %723 = vmatprep.subr.bf16.mxu0 (!%p138_p2), %v722_v12  ;;  %v730_v27 = vpack.c.bf16 (!%p138_p2), %v626_v23, %v625_v22 }
   0xd   : > { %s875_s13 = smov (!%p161_p3, %s600_s13), 1  ;;  %709 = vmatpush3.bf16.msra.mxu1 %v706_v8 }
   0xe   : > { %s632_s11 = sshll.u32 %s875_s13, 4  ;;  %725 = vmatpush3.bf16.msra.mxu0 %v722_v12  ;;  %711 = vmatprep.subr.bf16.mxu1 %v710_v16 }
   0xf   : > { %s828_s16 = scalar_lea.vmem %s870_s0, %s632_s11  ;;  %727 = vmatprep.subr.bf16.mxu0 %v726_v20  ;;  %s170_s29 = scalar_lea.vmem %s873_s3, %s632_s11 }
  0x10   : > { %v177_v18 = vld [vmem:[%s828_s16 + $0x2] sm:$0xff]  ;;  %v178_v24 = vld [vmem:[%s828_s16 + $0xa] sm:$0x1]  ;;  %v172_v30 = vld [vmem:[%s828_s16 + $0xb] sm:$0x1] }
  0x11   : > { %v347_v19 = vld [vmem:[%s828_s16 + $0x1] sm:$0xff]  ;;  %666 = vmatprep.mubr.msk.f32.mxu1 %vm184_vm0, %v177_v18  ;;  %v348_v25 = vld [vmem:[%s828_s16 + $0x9] sm:$0x1] }
  0x12   : > { %688 = vmatprep.mubr.msk.f32.mxu0 %vm184_vm0, %v347_v19  ;;  %667 = vmatmul.mubr.msk.f32.vlgmr.msra.gmra.mrb[0].mxu1 %vm184_vm0, %v178_v24  ;;  %v171_v28 = vld [vmem:[%s828_s16 + $0x3] sm:$0xff] }
  0x13   : > { %689 = vmatmul.mubr.msk.f32.vlgmr.msra.gmra.mrb[0].mxu0 %vm184_vm0, %v348_v25  ;;  %713 = vmatpush3.bf16.msra.mxu1 %v710_v16  ;;  %v437_v29 = vld [vmem:[%s828_s16] sm:$0xff]  ;;  %v438_v31 = vld [vmem:[%s828_s16 + $0x8] sm:$0x1] }
  0x14   : > { %729 = vmatpush3.bf16.msra.mxu0 %v726_v20  ;;  %715 = vmatprep.subr.bf16.mxu1 %v714_v26 }
  0x15   : > { %731 = vmatprep.subr.bf16.mxu0 %v730_v27  ;;  %677 = vmatprep.mubr.msk.f32.mxu1 %vm184_vm0, %v171_v28 }
  0x16   : > { %699 = vmatprep.mubr.msk.f32.mxu0 %vm184_vm0, %v437_v29 }
  0x17   : > { %717 = vmatpush3.bf16.msra.mxu1 %v714_v26 }
  0x18   : > { %733 = vmatpush3.bf16.msra.mxu0 %v730_v27 }
  0x1a   : > { %678 = vmatmul.mubr.msk.f32.vlgmr.msra.gmra.mrb[0].mxu1 %vm184_vm0, %v172_v30 }
  0x1b   : > { %700 = vmatmul.mubr.msk.f32.vlgmr.msra.gmra.mrb[0].mxu0 %vm184_vm0, %v438_v31 }
  0xed   : > { %v679_v32 = vpop.f32.mrb[0].mxu1 }
  0xee   : > { %v701_v33 = vpop.f32.mrb[0].mxu0  ;;  %v338_v35 = vpop.f32.mrb[1].mxu1 }
  0xef   : > { %v734_v36 = vadd.f32 %v701_v33, %v679_v32  ;;  %v516_v37 = vpop.f32.mrb[1].mxu0 }
  0xf0   : > { %v735_v38 = vadd.f32 %v516_v37, %v338_v35 }
  0xf1   : > { %v535_v39 = vadd.f32 %v734_v36, %v629_v34 }
  0xf2   : > { %v534_v40 = vadd.f32 %v735_v38, %v629_v34 }
  0xf3   : > { %vm537_vm1 = vcmp.ge.f32.partialorder %v535_v39, 0.0  ;;  %v539_v41 = vmul.f32 0.2, %v535_v39 }
  0xf4   : > { %vm536_vm3 = vcmp.ge.f32.partialorder %v534_v40, 0.0  ;;  %v538_v42 = vmul.f32 0.2, %v534_v40 }
  0xf5   : > { %v541_v43 = vsel %vm537_vm1, %v535_v39, %v539_v41 }
  0xf6   : > { %544 = vst.msk [vmem:[%s170_s29 + $0x8] sm:$0x1] %vm543_vm2, %v541_v43  ;;  %v540_v44 = vsel %vm536_vm3, %v534_v40, %v538_v42 }
  0xf7   : > { %542 = vst.msk [vmem:[%s170_s29] sm:$0xff] %vm184_vm0, %v540_v44 }
  0xf8 PF: > { %s13_s12 = sadd.s32 1, %s754_s12  }
  0xf9   : > { %p10_p4 = scmp.ge.s32.totalorder %s13_s12, 4  }
  0xfb   :  { %12 = sbr.rel (!%p10_p4) target bundleno = 1 (0x1), region = 65 }

// kernel: generator_forward.9
= control target key start
LH: loop header
LB: loop body
LE: loop exit
PB: predicated region body
PF: predicated region fallthrough
CT: control target
= control target key end

     0   :  { %s943_s12 = smov 0   ;;  %s1032_s0 = inlined_call_operand.vmem [shape: f32[2,14,16], index: 0, kind: input, shape index: {}]   ;;  %s1033_s1 = inlined_call_operand.vmem [shape: f32[7,16,32], index: 1, kind: input, shape index: {}]   ;;  %s1034_s2 = inlined_call_operand.vmem [shape: f32[1,32], index: 2, kind: input, shape index: {}]   ;;  %s1035_s3 = inlined_call_operand.vmem [shape: f32[2,8,32], index: 3, kind: output, shape index: {}]  }
   0x1 LB: > { %s779_s13 = sadd.s32 4294967295, %s918_s12   ;;  %p783_p0 = scmp.ge.s32.totalorder %s918_s12, 1  ;;  %s918_s12 = sphi %s943_s12, %s13_s12  }
   0x2   : > { %p137_p1 = scmp.lt.s32.totalorder %s918_s12, 3 }
   0x4   : > { %p138_p2 = pnand %p783_p0, %p137_p1 }
   0x5   : > { %v787_v0 = vld [vmem:[%s1033_s1 + $0x10] sm:$0xff] (!%p138_p2)  ;;  %v788_v1 = vld [vmem:[%s1033_s1 + $0x18] sm:$0xff] (!%p138_p2)  ;;  %v170_v2 = vld [vmem:[%s1033_s1] sm:$0xff] (!%p138_p2)  ;;  %v920_v3 = vmov (!%p138_p2), 0.0|0.0   ;;  %p160_p3 = scmp.lt.s32.totalorder (!%p138_p2), %s779_s13, 1  ;;  %vm921_vm0 = vmmov (!%p138_p2), 0  }
   0x6   : > { %141 = sbr.rel (%p138_p2) target bundleno = 249 (0xf9), region = 32  ;;  %880 = vmatprep.subr.bf16.mxu0 (!%p138_p2), %v920_v3  ;;  %v881_v4 = vpack.c.bf16 (!%p138_p2), %v788_v1, %v787_v0  ;;  %883 = vmatprep.subr.bf16.mxu1 (!%p138_p2), %v920_v3  ;;  %v171_v5 = vld [vmem:[%s1033_s1 + $0x8] sm:$0xff] (!%p138_p2)  ;;  %v791_v6 = vld [vmem:[%s1033_s1 + $0x20] sm:$0xff] (!%p138_p2)  ;;  %v922_v8 = vmov (!%p138_p2), 0.0   ;;  %v794_v10 = vld [vmem:[%s1033_s1 + $0x30] sm:$0xff] (!%p138_p2)  ;;  %vm176_vm1 = vcmask (!%p138_p2), 130048  }
   0x7   : > { %v884_v7 = vpack.c.bf16 (!%p138_p2), %v171_v5, %v170_v2  ;;  %835 = vmatprep.mubr.msk.f32.mxu0 (!%p138_p2), %vm921_vm0, %v922_v8  ;;  %842 = vmatprep.mubr.msk.f32.mxu1 (!%p138_p2), %vm921_vm0, %v922_v8  ;;  %v792_v9 = vld [vmem:[%s1033_s1 + $0x28] sm:$0xff] (!%p138_p2)  ;;  %v795_v11 = vld [vmem:[%s1033_s1 + $0x38] sm:$0xff] (!%p138_p2)  ;;  %v797_v14 = vld [vmem:[%s1033_s1 + $0x40] sm:$0xff] (!%p138_p2)  ;;  %vm724_vm3 = vcmask (!%p138_p2), 261120  }
   0x8   : > { %882 = vmatpush3.bf16.msra.mxu0 (!%p138_p2), %v881_v4  ;;  %v887_v12 = vpack.c.bf16 (!%p138_p2), %v792_v9, %v791_v6  ;;  %v890_v13 = vpack.c.bf16 (!%p138_p2), %v795_v11, %v794_v10  ;;  %v798_v15 = vld [vmem:[%s1033_s1 + $0x48] sm:$0xff] (!%p138_p2)  ;;  %v800_v16 = vld [vmem:[%s1033_s1 + $0x50] sm:$0xff] (!%p138_p2)  ;;  %v801_v17 = vld [vmem:[%s1033_s1 + $0x58] sm:$0xff] (!%p138_p2) }
   0x9   : > { %885 = vmatpush3.bf16.msra.mxu1 (!%p138_p2), %v884_v7  ;;  %886 = vmatprep.subr.bf16.mxu0 (!%p138_p2), %v920_v3  ;;  %v893_v21 = vpack.c.bf16 (!%p138_p2), %v798_v15, %v797_v14  ;;  %v896_v23 = vpack.c.bf16 (!%p138_p2), %v801_v17, %v800_v16  ;;  %v803_v24 = vld [vmem:[%s1033_s1 + $0x60] sm:$0xff] (!%p138_p2)  ;;  %v804_v25 = vld [vmem:[%s1033_s1 + $0x68] sm:$0xff] (!%p138_p2) }
   0xa   : > { %889 = vmatprep.subr.bf16.mxu1 (!%p138_p2), %v920_v3  ;;  %v899_v27 = vpack.c.bf16 (!%p138_p2), %v804_v25, %v803_v24  ;;  %v806_v48 = vld [vmem:[%s1034_s2] ss:$0 sm:$0xff] (!%p138_p2) }
   0xd   : > { %s1037_s13 = smov (!%p160_p3, %s779_s13), 1 }
   0xe   : > { %s809_s30 = sshll.u32 %s1037_s13, 4  ;;  %s786_s23 = sshll.u32 %s1037_s13, 3 }
   0xf   : > { %s986_s8 = scalar_lea.vmem %s1032_s0, %s809_s30  ;;  %s168_s26 = scalar_lea.vmem %s1035_s3, %s786_s23 }
  0x10   : > { %v172_v18 = vld [vmem:[%s986_s8 + $0x1] sm:$0xff] }
  0x11   : > { %v169_v19 = vld [vmem:[%s986_s8] sm:$0xff]  ;;  %836 = vmatmul.mubr.msk.f32.vlgmr.msra.gmra.mrb[0].mxu0 %vm176_vm1, %v172_v18 }
  0x12   : > { %843 = vmatmul.mubr.msk.f32.vlgmr.msra.gmra.mrb[0].mxu1 %vm176_vm1, %v169_v19  ;;  %888 = vmatpush3.bf16.msra.mxu0 %v887_v12  ;;  %v323_v20 = vld [vmem:[%s986_s8 + $0x2] sm:$0xff] }
  0x13   : > { %891 = vmatpush3.bf16.msra.mxu1 %v890_v13  ;;  %v401_v22 = vld [vmem:[%s986_s8 + $0x3] sm:$0xff]  ;;  %849 = vmatprep.mubr.msk.f32.mxu0 %vm921_vm0, %v922_v8 }
  0x14   : > { %892 = vmatprep.subr.bf16.mxu0 %v920_v3  ;;  %856 = vmatprep.mubr.msk.f32.mxu1 %vm921_vm0, %v922_v8  ;;  %v479_v26 = vld [vmem:[%s986_s8 + $0x4] sm:$0xff] }
  0x15   : > { %895 = vmatprep.subr.bf16.mxu1 %v920_v3  ;;  %850 = vmatmul.mubr.msk.f32.vlgmr.msra.gmra.mrb[2].mxu0 %vm176_vm1, %v323_v20  ;;  %v557_v28 = vld [vmem:[%s986_s8 + $0x5] sm:$0xff] }
  0x16   : > { %857 = vmatmul.mubr.msk.f32.vlgmr.msra.gmra.mrb[2].mxu1 %vm176_vm1, %v401_v22  ;;  %894 = vmatpush3.bf16.msra.mxu0 %v893_v21  ;;  %v635_v29 = vld [vmem:[%s986_s8 + $0x6] sm:$0xff] }
  0x17   : > { %897 = vmatpush3.bf16.msra.mxu1 %v896_v23  ;;  %863 = vmatprep.mubr.msk.f32.mxu0 %vm921_vm0, %v922_v8 }
  0x18   : > { %898 = vmatprep.subr.bf16.mxu0 %v920_v3  ;;  %870 = vmatprep.mubr.msk.f32.mxu1 %vm921_vm0, %v922_v8 }
  0x19   : > { %864 = vmatmul.mubr.msk.f32.vlgmr.msra.gmra.mrb[4].mxu0 %vm176_vm1, %v479_v26 }
  0x1a   : > { %871 = vmatmul.mubr.msk.f32.vlgmr.msra.gmra.mrb[4].mxu1 %vm176_vm1, %v557_v28  ;;  %900 = vmatpush3.bf16.msra.mxu0 %v899_v27 }
  0x1b   : > { %877 = vmatprep.mubr.msk.f32.mxu0 %vm921_vm0, %v922_v8 }
  0x1d   : > { %878 = vmatmul.mubr.msk.f32.vlgmr.msra.gmra.mrb[6].mxu0 %vm176_vm1, %v635_v29 }
  0xe4   : > { %v246_v30 = vpop.f32.mrb[0].mxu0 }
  0xe5   : > { %v319_v31 = vpop.f32.mrb[0].mxu1  ;;  %v837_v33 = vpop.f32.mrb[1].mxu0 }
  0xe6   : > { %v320_v32 = vadd.f32 %v319_v31, %v246_v30  ;;  %v844_v34 = vpop.f32.mrb[1].mxu1 }
  0xe8   : > { %v396_v35 = vpop.f32.mrb[2].mxu0 }
  0xe9   : > { %v474_v36 = vpop.f32.mrb[2].mxu1  ;;  %v400_v37 = vadd.f32 %v396_v35, %v320_v32  ;;  %v851_v38 = vpop.f32.mrb[3].mxu0 }
  0xea   : > { %v858_v39 = vpop.f32.mrb[3].mxu1 }
  0xeb   : > { %v478_v40 = vadd.f32 %v474_v36, %v400_v37 }
  0xec   : > { %v552_v41 = vpop.f32.mrb[4].mxu0 }
  0xed   : > { %v630_v42 = vpop.f32.mrb[4].mxu1  ;;  %v556_v43 = vadd.f32 %v552_v41, %v478_v40  ;;  %v865_v44 = vpop.f32.mrb[5].mxu0 }
  0xee   : > { %v872_v45 = vpop.f32.mrb[5].mxu1 }
  0xef   : > { %v634_v46 = vadd.f32 %v630_v42, %v556_v43 }
  0xf0   : > { %v708_v47 = vpop.f32.mrb[6].mxu0 }
  0xf1   : > { %v712_v49 = vadd.f32 %v708_v47, %v634_v46  ;;  %v879_v50 = vpop.f32.mrb[7].mxu0 }
  0xf3   : > { %v720_v51 = vadd.f32 %v806_v48, %v712_v49 }
  0xf5   : > { %vm721_vm2 = vcmp.ge.f32.partialorder %v720_v51, 0.0  ;;  %v722_v52 = vmul.f32 0.2, %v720_v51 }
  0xf7   : > { %v723_v53 = vsel %vm721_vm2, %v720_v51, %v722_v52 }
  0xf8   : > { %725 = vst.msk [vmem:[%s168_s26] sm:$0xff] %vm724_vm3, %v723_v53 }
  0xf9 PF: > { %s13_s12 = sadd.s32 1, %s918_s12  }
  0xfa   : > { %p10_p4 = scmp.ge.s32.totalorder %s13_s12, 4  }
  0xfc   :  { %12 = sbr.rel (!%p10_p4) target bundleno = 1 (0x1), region = 68 }

// kernel: generator_forward.12
= control target key start
LH: loop header
LB: loop body
LE: loop exit
PB: predicated region body
PF: predicated region fallthrough
CT: control target
= control target key end

     0   :  { %s864_s12 = smov 0   ;;  %s966_s0 = inlined_call_operand.vmem [shape: f32[2,48,8], index: 0, kind: input, shape index: {}]   ;;  %s967_s1 = inlined_call_operand.vmem [shape: f32[3,8,16], index: 1, kind: input, shape index: {}]   ;;  %s968_s2 = inlined_call_operand.vmem [shape: f32[1,16], index: 2, kind: input, shape index: {}]   ;;  %s969_s3 = inlined_call_operand.vmem [shape: f32[2,38,8], index: 3, kind: output, shape index: {}]  }
   0x1 LB: > { %s695_s13 = sadd.s32 4294967295, %s838_s12   ;;  %p699_p0 = scmp.ge.s32.totalorder %s838_s12, 1  ;;  %s838_s12 = sphi %s864_s12, %s13_s12  }
   0x2   : > { %p137_p1 = scmp.lt.s32.totalorder %s838_s12, 3 }
   0x4   : > { %p138_p2 = pnand %p699_p0, %p137_p1 }
   0x5   : > { %v702_v0 = vld [vmem:[%s967_s1 + $0x8] sm:$0xff] (!%p138_p2)  ;;  %p161_p3 = scmp.lt.s32.totalorder (!%p138_p2), %s695_s13, 1  ;;  %v840_v1 = vmov (!%p138_p2), 0.0   ;;  %vm841_vm0 = vmmov (!%p138_p2), 0   ;;  %vm184_vm1 = vcmask (!%p138_p2), 64512   ;;  %v713_v2 = vld [vmem:[%s967_s1 + $0x10] sm:$0xff] (!%p138_p2) }
   0x6   : > { %141 = sbr.rel (%p138_p2) target bundleno = 502 (0x1f6), region = 32  ;;  %745 = vmatprep.subr.mxu0 (!%p138_p2), %v840_v1  ;;  %796 = vmatprep.subr.mxu1 (!%p138_p2), %v840_v1  ;;  %v176_v3 = vld [vmem:[%s967_s1] sm:$0xff] (!%p138_p2)  ;;  %s842_s24 = smov (!%p138_p2), 8   ;;  %vm638_vm7 = vcmask (!%p138_p2), 62464  }
   0x7   : > { %746 = vmatpush3.msra.mxu0 (!%p138_p2), %v702_v0  ;;  %797 = vmatpush3.msra.mxu1 (!%p138_p2), %v702_v0  ;;  %v719_v34 = vld [vmem:[%s968_s2] ss:$0 sm:$0xff] (!%p138_p2)  ;;  %s843_s27 = smov (!%p138_p2), 120  }
   0x8   : > { %747 = vmatprep.mubr.msk.f32.mxu0 (!%p138_p2), %vm841_vm0, %v840_v1  ;;  %756 = vmatprep.mubr.msk.f32.mxu1 (!%p138_p2), %vm841_vm0, %v840_v1 }
   0x9   : > { %779 = vmatprep.subr.mxu0 (!%p138_p2), %v840_v1  ;;  %762 = vmatprep.subr.mxu1 (!%p138_p2), %v840_v1 }
   0xd   : > { %s971_s13 = smov (!%p161_p3, %s695_s13), 1 }
   0xe   : > { %s798_s16 = smul.u32 48, %s971_s13 }
   0xf   : > { %s799_s28 = smul.u32 40, %s971_s13 }
  0x10   : > { %s883_s19 = scalar_lea.vmem %s966_s0, %s798_s16 }
  0x11   : > { %v177_v4 = vld [vmem:[%s883_s19 + $0x5] sm:$0xff]  ;;  %v893_v5 = vld [vmem:[%s883_s19 + $0x1d] sm:$0xff]  ;;  %v178_v6 = vld [vmem:[%s883_s19 + $0xd] sm:$0xff]  ;;  %s170_s4 = scalar_lea.vmem %s969_s3, %s799_s28 }
  0x12   : > { %748 = vmatmul.mubr.msk.f32.vlgmr.msra.gmra.mrb[0].mxu0 %vm184_vm1, %v177_v4  ;;  %757 = vmatmul.mubr.msk.f32.vlgmr.msra.gmra.mrb[0].mxu1 %vm184_vm1, %v893_v5  ;;  %v900_v7 = vld [vmem:[%s883_s19 + $0x25] sm:$0x3f]  ;;  %v179_v8 = vld [vmem:[%s883_s19 + $0x15] sm:$0xff] }
  0x13   : > { %780 = vmatpush3.msra.mxu0 %v713_v2  ;;  %763 = vmatpush3.msra.mxu1 %v176_v3  ;;  %v171_v9 = vld [vmem:[%s883_s19] sm:$0xff]  ;;  %v172_v10 = vld [vmem:[%s883_s19 + $0x8] sm:$0xff]  ;;  %v173_v12 = vld [vmem:[%s883_s19 + $0x10] sm:$0xff] }
  0x14   : > { %750 = vmatprep.mubr.msk.f32.mxu0 %vm841_vm0, %v840_v1  ;;  %759 = vmatprep.mubr.msk.f32.mxu1 %vm841_vm0, %v840_v1  ;;  %v395_v11 = vld [vmem:[%s883_s19 + $0xa] sm:$0xff]  ;;  %v396_v13 = vld [vmem:[%s883_s19 + $0x12] sm:$0xff]  ;;  %v397_v15 = vld [vmem:[%s883_s19 + $0x1a] sm:$0xff] }
  0x15   : > { %v174_v14 = vld [vmem:[%s883_s19 + $0x18] sm:$0xff]  ;;  %v175_v16 = vld [vmem:[%s883_s19 + $0x20] sm:$0x3f]  ;;  %v399_v18 = vld [vmem:[%s883_s19 + $0x2a] sm:$0x3f]  ;;  %596 = vrot.lane.b32.xlu0 %v178_v6, %s842_s24 }
  0x16   : > { %751 = vmatmul.mubr.msk.f32.gmra.mrb[2].mxu0 %vm184_vm1, %v178_v6  ;;  %760 = vmatmul.mubr.msk.f32.gmra.mrb[2].mxu1 %vm184_vm1, %v900_v7  ;;  %v398_v17 = vld [vmem:[%s883_s19 + $0x22] sm:$0xff] }
  0x17   : > { %753 = vmatprep.mubr.msk.f32.mxu0 %vm841_vm0, %v840_v1  ;;  %764 = vmatprep.mubr.msk.f32.mxu1 %vm841_vm0, %v840_v1 }
  0x18   : > { %594 = vrot.lane.b32.xlu1 %v177_v4, %s842_s24 }
  0x1a   : > { %754 = vmatmul.mubr.msk.f32.gmra.mrb[4].mxu0 %vm184_vm1, %v179_v8  ;;  %765 = vmatmul.mubr.msk.f32.vlgmr.msra.gmra.mrb[4].mxu1 %vm184_vm1, %v171_v9 }
  0x1b   : > { %767 = vmatprep.mubr.msk.f32.mxu1 %vm841_vm0, %v840_v1  ;;  %781 = vmatprep.mubr.msk.f32.mxu0 %vm841_vm0, %v840_v1 }
  0x1c   : > { %598 = vrot.lane.b32.xlu1 %v179_v8, %s842_s24 }
  0x1e   : > { %768 = vmatmul.mubr.msk.f32.gmra.mrb[6].mxu1 %vm184_vm1, %v172_v10  ;;  %782 = vmatmul.mubr.msk.f32.vlgmr.msra.gmra.mrb[6].mxu0 %vm184_vm1, %v395_v11 }
  0x1f   : > { %770 = vmatprep.mubr.msk.f32.mxu1 %vm841_vm0, %v840_v1  ;;  %784 = vmatprep.mubr.msk.f32.mxu0 %vm841_vm0, %v840_v1 }
  0x22   : > { %771 = vmatmul.mubr.msk.f32.gmra.mrb[8].mxu1 %vm184_vm1, %v173_v12  ;;  %785 = vmatmul.mubr.msk.f32.gmra.mrb[8].mxu0 %vm184_vm1, %v396_v13 }
  0x23   : > { %773 = vmatprep.mubr.msk.f32.mxu1 %vm841_vm0, %v840_v1  ;;  %787 = vmatprep.mubr.msk.f32.mxu0 %vm841_vm0, %v840_v1 }
  0x26   : > { %774 = vmatmul.mubr.msk.f32.gmra.mrb[10].mxu1 %vm184_vm1, %v174_v14  ;;  %788 = vmatmul.mubr.msk.f32.gmra.mrb[10].mxu0 %vm184_vm1, %v397_v15 }
  0x27   : > { %776 = vmatprep.mubr.msk.f32.mxu1 %vm841_vm0, %v840_v1  ;;  %790 = vmatprep.mubr.msk.f32.mxu0 %vm841_vm0, %v840_v1 }
  0x2a   : > { %777 = vmatmul.mubr.msk.f32.gmra.mrb[12].mxu1 %vm184_vm1, %v175_v16  ;;  %791 = vmatmul.mubr.msk.f32.gmra.mrb[12].mxu0 %vm184_vm1, %v398_v17 }
  0x2b   : > { %793 = vmatprep.mubr.msk.f32.mxu0 %vm841_vm0, %v840_v1 }
  0x2e   : > { %794 = vmatmul.mubr.msk.f32.gmra.mrb[14].mxu0 %vm184_vm1, %v399_v18 }
  0xe5   : > { %v266_v19 = vpop.f32.mrb[0].mxu0  ;;  %v281_v20 = vpop.f32.mrb[0].mxu1 }
  0xe6   : > { %v749_v21 = vpop.f32.mrb[1].mxu0  ;;  %v758_v22 = vpop.f32.mrb[1].mxu1 }
  0xe9   : > { %v271_v23 = vpop.f32.mrb[2].mxu0  ;;  %v286_v24 = vpop.f32.mrb[2].mxu1 }
  0xea   : > { %v752_v25 = vpop.f32.mrb[3].mxu0  ;;  %v761_v26 = vpop.f32.mrb[3].mxu1 }
  0xed   : > { %v276_v27 = vpop.f32.mrb[4].mxu0  ;;  %v371_v28 = vpop.f32.mrb[4].mxu1 }
  0xee   : > { %v372_v29 = vadd.f32 %v371_v28, %v266_v19  ;;  %v755_v30 = vpop.f32.mrb[5].mxu0  ;;  %v766_v31 = vpop.f32.mrb[5].mxu1 }
  0xf1   : > { %v376_v32 = vpop.f32.mrb[6].mxu1  ;;  %v483_v33 = vpop.f32.mrb[6].mxu0 }
  0xf2   : > { %v377_v35 = vadd.f32 %v376_v32, %v271_v23  ;;  %v507_v36 = vadd.f32 %v483_v33, %v372_v29  ;;  %v783_v37 = vpop.f32.mrb[7].mxu0  ;;  %v769_v38 = vpop.f32.mrb[7].mxu1 }
  0xf4   : > { %v519_v39 = vadd.f32 %v719_v34, %v507_v36 }
  0xf5   : > { %v381_v40 = vpop.f32.mrb[8].mxu1  ;;  %v488_v41 = vpop.f32.mrb[8].mxu0 }
  0xf6   : > { %v382_v42 = vadd.f32 %v381_v40, %v276_v27  ;;  %v508_v43 = vadd.f32 %v488_v41, %v377_v35  ;;  %v786_v44 = vpop.f32.mrb[9].mxu0  ;;  %v772_v45 = vpop.f32.mrb[9].mxu1  ;;  %vm554_vm2 = vcmp.ge.f32.partialorder %v519_v39, 0.0  ;;  %v559_v46 = vmul.f32 0.2, %v519_v39 }
  0xf7   : > { %v720_v13 = vmul.f32 -1.442695, %v519_v39 }
  0xf8   : > { %v520_v47 = vadd.f32 %v719_v34, %v508_v43  ;;  %v564_v49 = vsel %vm554_vm2, %v519_v39, %v559_v46 }
  0xf9   : > { %v493_v48 = vpop.f32.mrb[10].mxu0  ;;  %v386_v50 = vpop.f32.mrb[10].mxu1  ;;  %574 = vrot.lane.b32.xlu0 %v564_v49, %s842_s24  ;;  %812 = vpow2.f32 %v720_v13 }
  0xfa   : > { %v509_v51 = vadd.f32 %v493_v48, %v382_v42  ;;  %v387_v52 = vadd.f32 %v386_v50, %v281_v20  ;;  %v789_v53 = vpop.f32.mrb[11].mxu0  ;;  %v775_v54 = vpop.f32.mrb[11].mxu1  ;;  %vm555_vm3 = vcmp.ge.f32.partialorder %v520_v47, 0.0  ;;  %v560_v55 = vmul.f32 0.2, %v520_v47 }
  0xfb   : > { %v721_v14 = vmul.f32 -1.442695, %v520_v47 }
  0xfc   : > { %v521_v56 = vadd.f32 %v719_v34, %v509_v51  ;;  %v565_v58 = vsel %vm555_vm3, %v520_v47, %v560_v55 }
  0xfd   : > { %v498_v57 = vpop.f32.mrb[12].mxu0  ;;  %v391_v59 = vpop.f32.mrb[12].mxu1  ;;  %576 = vrot.lane.b32.xlu0 %v565_v58, %s842_s24  ;;  %814 = vpow2.f32 %v721_v14 }
  0xfe   : > { %v510_v60 = vadd.f32 %v498_v57, %v387_v52  ;;  %v392_v61 = vadd.f32 %v391_v59, %v286_v24  ;;  %v792_v62 = vpop.f32.mrb[13].mxu0  ;;  %v778_v63 = vpop.f32.mrb[13].mxu1  ;;  %vm556_vm4 = vcmp.ge.f32.partialorder %v521_v56, 0.0  ;;  %v561_v0 = vmul.f32 0.2, %v521_v56 }
  0xff   : > { %v722_v15 = vmul.f32 -1.442695, %v521_v56 }
 0x100   : > { %v522_v1 = vadd.f32 %v719_v34, %v510_v60  ;;  %v566_v3 = vsel %vm556_vm4, %v521_v56, %v561_v0 }
 0x101   : > { %v503_v2 = vpop.f32.mrb[14].mxu0  ;;  %578 = vrot.lane.b32.xlu1 %v566_v3, %s842_s24  ;;  %816 = vpow2.f32 %v722_v15 }
 0x102   : > { %v511_v4 = vadd.f32 %v503_v2, %v392_v61  ;;  %v795_v6 = vpop.f32.mrb[15].mxu0  ;;  %vm557_vm5 = vcmp.ge.f32.partialorder %v522_v1, 0.0  ;;  %v562_v8 = vmul.f32 0.2, %v522_v1  ;;  %v723_v18 = vmul.f32 -1.442695, %v522_v1 }
 0x103   : > { %v813_v16 = vpop.eup %812 }
 0x104   : > { %v523_v9 = vadd.f32 %v719_v34, %v511_v4  ;;  %v567_v10 = vsel %vm557_vm5, %v522_v1, %v562_v8  ;;  %v539_v19 = vadd.f32 1.0, %v813_v16 }
 0x105   : > { %580 = vrot.lane.b32.xlu1 %v567_v10, %s842_s24 }
 0x106   : > { %vm558_vm6 = vcmp.ge.f32.partialorder %v523_v9, 0.0  ;;  %v563_v11 = vmul.f32 0.2, %v523_v9  ;;  %v724_v17 = vmul.f32 -1.442695, %v523_v9 }
 0x107   : > { %v815_v20 = vpop.eup %814 }
 0x108   : > { %v568_v12 = vsel %vm558_vm6, %v523_v9, %v563_v11  ;;  %818 = vpow2.f32 %v724_v17  ;;  %v540_v21 = vadd.f32 1.0, %v815_v20 }
 0x109   : > { %582 = vrot.lane.b32.xlu0 %v568_v12, %s842_s24  ;;  %602 = vrot.lane.b32.xlu1 %v900_v7, %s842_s24  ;;  %820 = vpow2.f32 %v723_v18  ;;  %v597_v7 = vpop.permute.xlu0 %596 }
 0x10a   : > { %822 = vrcp.f32 %v539_v19 }
 0x10b   : > { %v817_v22 = vpop.eup %816  ;;  %824 = vrcp.f32 %v540_v21 }
 0x10c   : > { %v541_v23 = vadd.f32 1.0, %v817_v22 }
 0x10d   : > { %600 = vrot.lane.b32.xlu0 %v893_v5, %s842_s24  ;;  %v595_v5 = vpop.permute.xlu1 %594 }
 0x10e   : > { %826 = vrcp.f32 %v541_v23 }
 0x111   : > { %v599_v30 = vpop.permute.xlu1 %598 }
 0x112   : > { %v819_v24 = vpop.eup %818 }
 0x113   : > { %v821_v25 = vpop.eup %820  ;;  %v543_v29 = vadd.f32 1.0, %v819_v24 }
 0x114   : > { %v823_v26 = vpop.eup %822  ;;  %v542_v32 = vadd.f32 1.0, %v821_v25 }
 0x115   : > { %v825_v33 = vpop.eup %824  ;;  %828 = vrcp.f32 %v543_v29 }
 0x116   : > { %830 = vrcp.f32 %v542_v32 }
 0x118   : > { %v827_v37 = vpop.eup %826 }
 0x11f   : > { %v829_v42 = vpop.eup %828 }
 0x120   : > { %v831_v46 = vpop.eup %830 }
 0x16b   : > { %v575_v27 = vpop.permute.xlu0 %574 }
 0x16c   : > { %v589_v28 = vmul.f32 %v823_v26, %v575_v27 }
 0x16e   : > { %v609_v31 = vadd.f32 %v595_v5, %v589_v28 }
 0x16f   : > { %v577_v34 = vpop.permute.xlu0 %576 }
 0x170   : > { %v590_v35 = vmul.f32 %v825_v33, %v577_v34  ;;  %619 = vrot.lane.b32.xlu0 %v609_v31, %s843_s27 }
 0x172   : > { %v610_v36 = vadd.f32 %v597_v7, %v590_v35 }
 0x173   : > { %v579_v38 = vpop.permute.xlu1 %578 }
 0x174   : > { %v591_v39 = vmul.f32 %v827_v37, %v579_v38  ;;  %621 = vrot.lane.b32.xlu1 %v610_v36, %s843_s27 }
 0x176   : > { %v611_v40 = vadd.f32 %v599_v30, %v591_v39 }
 0x177   : > { %v581_v41 = vpop.permute.xlu1 %580 }
 0x178   : > { %623 = vrot.lane.b32.xlu0 %v611_v40, %s843_s27  ;;  %v592_v47 = vmul.f32 %v831_v46, %v581_v41 }
 0x17b   : > { %v583_v43 = vpop.permute.xlu0 %582  ;;  %v603_v45 = vpop.permute.xlu1 %602 }
 0x17c   : > { %v593_v44 = vmul.f32 %v829_v42, %v583_v43 }
 0x17e   : > { %v613_v48 = vadd.f32 %v603_v45, %v593_v44 }
 0x17f   : > { %v601_v49 = vpop.permute.xlu0 %600 }
 0x180   : > { %v612_v50 = vadd.f32 %v601_v49, %v592_v47  ;;  %627 = vrot.lane.b32.xlu0 %v613_v48, %s843_s27 }
 0x182   : > { %625 = vrot.lane.b32.xlu1 %v612_v50, %s843_s27 }
 0x1e2   : > { %v620_v51 = vpop.permute.xlu0 %619 }
 0x1e3   : > { %634 = vst.msk [vmem:[%s170_s4] sm:$0xff] %vm184_vm1, %v620_v51 }
 0x1e6   : > { %v622_v52 = vpop.permute.xlu1 %621 }
 0x1e7   : > { %635 = vst.msk [vmem:[%s170_s4 + $0x8] sm:$0xff] %vm184_vm1, %v622_v52 }
 0x1ea   : > { %v624_v53 = vpop.permute.xlu0 %623 }
 0x1eb   : > { %636 = vst.msk [vmem:[%s170_s4 + $0x10] sm:$0xff] %vm184_vm1, %v624_v53 }
 0x1f2   : > { %v628_v54 = vpop.permute.xlu0 %627 }
 0x1f3   : > { %639 = vst.msk [vmem:[%s170_s4 + $0x20] sm:$0x3f] %vm638_vm7, %v628_v54 }
 0x1f4   : > { %v626_v55 = vpop.permute.xlu1 %625 }
 0x1f5   : > { %637 = vst.msk [vmem:[%s170_s4 + $0x18] sm:$0xff] %vm184_vm1, %v626_v55 }
 0x1f6 PF: > { %s13_s12 = sadd.s32 1, %s838_s12  }
 0x1f7   : > { %p10_p4 = scmp.ge.s32.totalorder %s13_s12, 4  }
 0x1f9   :  { %12 = sbr.rel (!%p10_p4) target bundleno = 1 (0x1), region = 64 }

// kernel: generator_forward.11
= control target key start
LH: loop header
LB: loop body
LE: loop exit
PB: predicated region body
PF: predicated region fallthrough
CT: control target
= control target key end

     0   :  { %s790_s12 = smov 0   ;;  %s881_s0 = inlined_call_operand.vmem [shape: f32[2,22,16], index: 0, kind: input, shape index: {}]   ;;  %s882_s1 = inlined_call_operand.vmem [shape: f32[4,16,16], index: 1, kind: input, shape index: {}]   ;;  %s883_s2 = inlined_call_operand.vmem [shape: f32[1,16], index: 2, kind: input, shape index: {}]   ;;  %s884_s3 = inlined_call_operand.vmem [shape: f32[2,19,16], index: 3, kind: output, shape index: {}]  }
   0x1 LB: > { %s635_s13 = sadd.s32 4294967295, %s765_s12   ;;  %p639_p0 = scmp.ge.s32.totalorder %s765_s12, 1  ;;  %s765_s12 = sphi %s790_s12, %s13_s12  }
   0x2   : > { %p137_p1 = scmp.lt.s32.totalorder %s765_s12, 3 }
   0x4   : > { %p138_p2 = pnand %p639_p0, %p137_p1 }
   0x5   : > { %v642_v0 = vld [vmem:[%s882_s1 + $0x10] sm:$0xff] (!%p138_p2)  ;;  %v643_v1 = vld [vmem:[%s882_s1 + $0x18] sm:$0xff] (!%p138_p2)  ;;  %v174_v2 = vld [vmem:[%s882_s1] sm:$0xff] (!%p138_p2)  ;;  %v767_v3 = vmov (!%p138_p2), 0.0|0.0   ;;  %p161_p3 = scmp.lt.s32.totalorder (!%p138_p2), %s635_s13, 1  ;;  %vm768_vm0 = vmmov (!%p138_p2), 0  }
   0x6   : > { %141 = sbr.rel (%p138_p2) target bundleno = 260 (0x104), region = 32  ;;  %735 = vmatprep.subr.bf16.mxu0 (!%p138_p2), %v767_v3  ;;  %v736_v4 = vpack.c.bf16 (!%p138_p2), %v643_v1, %v642_v0  ;;  %738 = vmatprep.subr.bf16.mxu1 (!%p138_p2), %v767_v3  ;;  %v175_v5 = vld [vmem:[%s882_s1 + $0x8] sm:$0xff] (!%p138_p2)  ;;  %v769_v7 = vmov (!%p138_p2), 0.0   ;;  %v650_v8 = vld [vmem:[%s882_s1 + $0x20] sm:$0xff] (!%p138_p2)  ;;  %v655_v10 = vld [vmem:[%s882_s1 + $0x30] sm:$0xff] (!%p138_p2)  ;;  %vm182_vm1 = vcmask (!%p138_p2), 130048  }
   0x7   : > { %v739_v6 = vpack.c.bf16 (!%p138_p2), %v175_v5, %v174_v2  ;;  %687 = vmatprep.mubr.msk.f32.mxu0 (!%p138_p2), %vm768_vm0, %v769_v7  ;;  %700 = vmatprep.mubr.msk.f32.mxu1 (!%p138_p2), %vm768_vm0, %v769_v7  ;;  %v651_v9 = vld [vmem:[%s882_s1 + $0x28] sm:$0xff] (!%p138_p2)  ;;  %v656_v11 = vld [vmem:[%s882_s1 + $0x38] sm:$0xff] (!%p138_p2)  ;;  %v660_v46 = vld [vmem:[%s883_s2] ss:$0 sm:$0xff] (!%p138_p2)  ;;  %vm578_vm5 = vcmask (!%p138_p2), 124928  }
   0x8   : > { %737 = vmatpush3.bf16.msra.mxu0 (!%p138_p2), %v736_v4  ;;  %v742_v12 = vpack.c.bf16 (!%p138_p2), %v651_v9, %v650_v8  ;;  %v745_v13 = vpack.c.bf16 (!%p138_p2), %v656_v11, %v655_v10 }
   0x9   : > { %740 = vmatpush3.bf16.msra.mxu1 (!%p138_p2), %v739_v6  ;;  %741 = vmatprep.subr.bf16.mxu0 (!%p138_p2), %v767_v3 }
   0xa   : > { %744 = vmatprep.subr.bf16.mxu1 (!%p138_p2), %v767_v3 }
   0xd   : > { %s886_s13 = smov (!%p161_p3, %s635_s13), 1 }
   0xe   : > { %s747_s30 = smul.u32 24, %s886_s13 }
  0x10   : > { %s832_s6 = scalar_lea.vmem %s881_s0, %s747_s30  ;;  %s170_s11 = scalar_lea.vmem %s884_s3, %s747_s30 }
  0x11   : > { %v176_v14 = vld [vmem:[%s832_s6 + $0x2] sm:$0xff]  ;;  %v177_v16 = vld [vmem:[%s832_s6 + $0xa] sm:$0xff]  ;;  %v178_v18 = vld [vmem:[%s832_s6 + $0x12] sm:$0x7] }
  0x12   : > { %v171_v15 = vld [vmem:[%s832_s6 + $0x3] sm:$0xff]  ;;  %688 = vmatmul.mubr.msk.f32.vlgmr.msra.gmra.mrb[0].mxu0 %vm182_vm1, %v176_v14  ;;  %v172_v17 = vld [vmem:[%s832_s6 + $0xb] sm:$0xff]  ;;  %v173_v19 = vld [vmem:[%s832_s6 + $0x13] sm:$0x7] }
  0x13   : > { %701 = vmatmul.mubr.msk.f32.vlgmr.msra.gmra.mrb[0].mxu1 %vm182_vm1, %v171_v15  ;;  %743 = vmatpush3.bf16.msra.mxu0 %v742_v12  ;;  %v361_v20 = vld [vmem:[%s832_s6 + $0x1] sm:$0xff]  ;;  %v362_v22 = vld [vmem:[%s832_s6 + $0x9] sm:$0xff]  ;;  %v363_v24 = vld [vmem:[%s832_s6 + $0x11] sm:$0x7] }
  0x14   : > { %746 = vmatpush3.bf16.msra.mxu1 %v745_v13  ;;  %690 = vmatprep.mubr.msk.f32.mxu0 %vm768_vm0, %v769_v7  ;;  %v459_v21 = vld [vmem:[%s832_s6] sm:$0xff]  ;;  %v460_v23 = vld [vmem:[%s832_s6 + $0x8] sm:$0xff]  ;;  %v461_v25 = vld [vmem:[%s832_s6 + $0x10] sm:$0x7] }
  0x15   : > { %703 = vmatprep.mubr.msk.f32.mxu1 %vm768_vm0, %v769_v7 }
  0x16   : > { %691 = vmatmul.mubr.msk.f32.gmra.mrb[2].mxu0 %vm182_vm1, %v177_v16 }
  0x17   : > { %704 = vmatmul.mubr.msk.f32.gmra.mrb[2].mxu1 %vm182_vm1, %v172_v17  ;;  %693 = vmatprep.mubr.msk.f32.mxu0 %vm768_vm0, %v769_v7 }
  0x18   : > { %706 = vmatprep.mubr.msk.f32.mxu1 %vm768_vm0, %v769_v7 }
  0x1a   : > { %694 = vmatmul.mubr.msk.f32.gmra.mrb[4].mxu0 %vm182_vm1, %v178_v18 }
  0x1b   : > { %707 = vmatmul.mubr.msk.f32.gmra.mrb[4].mxu1 %vm182_vm1, %v173_v19  ;;  %713 = vmatprep.mubr.msk.f32.mxu0 %vm768_vm0, %v769_v7 }
  0x1c   : > { %726 = vmatprep.mubr.msk.f32.mxu1 %vm768_vm0, %v769_v7 }
  0x1e   : > { %714 = vmatmul.mubr.msk.f32.vlgmr.msra.gmra.mrb[6].mxu0 %vm182_vm1, %v361_v20 }
  0x1f   : > { %727 = vmatmul.mubr.msk.f32.vlgmr.msra.gmra.mrb[6].mxu1 %vm182_vm1, %v459_v21  ;;  %716 = vmatprep.mubr.msk.f32.mxu0 %vm768_vm0, %v769_v7 }
  0x20   : > { %729 = vmatprep.mubr.msk.f32.mxu1 %vm768_vm0, %v769_v7 }
  0x22   : > { %717 = vmatmul.mubr.msk.f32.gmra.mrb[8].mxu0 %vm182_vm1, %v362_v22 }
  0x23   : > { %730 = vmatmul.mubr.msk.f32.gmra.mrb[8].mxu1 %vm182_vm1, %v460_v23  ;;  %719 = vmatprep.mubr.msk.f32.mxu0 %vm768_vm0, %v769_v7 }
  0x24   : > { %732 = vmatprep.mubr.msk.f32.mxu1 %vm768_vm0, %v769_v7 }
  0x26   : > { %720 = vmatmul.mubr.msk.f32.gmra.mrb[10].mxu0 %vm182_vm1, %v363_v24 }
  0x27   : > { %733 = vmatmul.mubr.msk.f32.gmra.mrb[10].mxu1 %vm182_vm1, %v461_v25 }
  0xe5   : > { %v258_v26 = vpop.f32.mrb[0].mxu0 }
  0xe6   : > { %v347_v27 = vpop.f32.mrb[0].mxu1  ;;  %v689_v29 = vpop.f32.mrb[1].mxu0 }
  0xe7   : > { %v348_v28 = vadd.f32 %v347_v27, %v258_v26  ;;  %v702_v30 = vpop.f32.mrb[1].mxu1 }
  0xe9   : > { %v263_v31 = vpop.f32.mrb[2].mxu0 }
  0xea   : > { %v352_v32 = vpop.f32.mrb[2].mxu1  ;;  %v692_v34 = vpop.f32.mrb[3].mxu0 }
  0xeb   : > { %v353_v33 = vadd.f32 %v352_v32, %v263_v31  ;;  %v705_v35 = vpop.f32.mrb[3].mxu1 }
  0xed   : > { %v268_v36 = vpop.f32.mrb[4].mxu0 }
  0xee   : > { %v357_v37 = vpop.f32.mrb[4].mxu1  ;;  %v695_v39 = vpop.f32.mrb[5].mxu0 }
  0xef   : > { %v358_v38 = vadd.f32 %v357_v37, %v268_v36  ;;  %v708_v40 = vpop.f32.mrb[5].mxu1 }
  0xf1   : > { %v442_v41 = vpop.f32.mrb[6].mxu0 }
  0xf2   : > { %v540_v42 = vpop.f32.mrb[6].mxu1  ;;  %v456_v43 = vadd.f32 %v442_v41, %v348_v28  ;;  %v715_v44 = vpop.f32.mrb[7].mxu0 }
  0xf3   : > { %v728_v45 = vpop.f32.mrb[7].mxu1 }
  0xf4   : > { %v554_v47 = vadd.f32 %v540_v42, %v456_v43 }
  0xf5   : > { %v447_v48 = vpop.f32.mrb[8].mxu0 }
  0xf6   : > { %v545_v49 = vpop.f32.mrb[8].mxu1  ;;  %v564_v50 = vadd.f32 %v660_v46, %v554_v47  ;;  %v457_v51 = vadd.f32 %v447_v48, %v353_v33  ;;  %v718_v52 = vpop.f32.mrb[9].mxu0 }
  0xf7   : > { %v731_v53 = vpop.f32.mrb[9].mxu1 }
  0xf8   : > { %vm567_vm2 = vcmp.ge.f32.partialorder %v564_v50, 0.0  ;;  %v570_v54 = vmul.f32 0.2, %v564_v50  ;;  %v555_v55 = vadd.f32 %v545_v49, %v457_v51 }
  0xf9   : > { %v452_v56 = vpop.f32.mrb[10].mxu0 }
  0xfa   : > { %v550_v57 = vpop.f32.mrb[10].mxu1  ;;  %v573_v58 = vsel %vm567_vm2, %v564_v50, %v570_v54  ;;  %v565_v59 = vadd.f32 %v660_v46, %v555_v55  ;;  %v458_v60 = vadd.f32 %v452_v56, %v358_v38  ;;  %v721_v61 = vpop.f32.mrb[11].mxu0 }
  0xfb   : > { %v734_v62 = vpop.f32.mrb[11].mxu1  ;;  %576 = vst.msk [vmem:[%s170_s11] sm:$0xff] %vm182_vm1, %v573_v58 }
  0xfc   : > { %vm568_vm3 = vcmp.ge.f32.partialorder %v565_v59, 0.0  ;;  %v571_v63 = vmul.f32 0.2, %v565_v59  ;;  %v556_v0 = vadd.f32 %v550_v57, %v458_v60 }
  0xfe   : > { %v574_v1 = vsel %vm568_vm3, %v565_v59, %v571_v63  ;;  %v566_v2 = vadd.f32 %v660_v46, %v556_v0 }
  0xff   : > { %577 = vst.msk [vmem:[%s170_s11 + $0x8] sm:$0xff] %vm182_vm1, %v574_v1 }
 0x100   : > { %vm569_vm4 = vcmp.ge.f32.partialorder %v566_v2, 0.0  ;;  %v572_v3 = vmul.f32 0.2, %v566_v2 }
 0x102   : > { %v575_v4 = vsel %vm569_vm4, %v566_v2, %v572_v3 }
 0x103   : > { %579 = vst.msk [vmem:[%s170_s11 + $0x10] sm:$0x7] %vm578_vm5, %v575_v4 }
 0x104 PF: > { %s13_s12 = sadd.s32 1, %s765_s12  }
 0x105   : > { %p10_p4 = scmp.ge.s32.totalorder %s13_s12, 4  }
 0x107   :  { %12 = sbr.rel (!%p10_p4) target bundleno = 1 (0x1), region = 65 }

// kernel: generator_forward.15
= control target key start
LH: loop header
LB: loop body
LE: loop exit
PB: predicated region body
PF: predicated region fallthrough
CT: control target
= control target key end

     0   :  { %s1547_s0 = inlined_call_operand.vmem [shape: f32[2,44,8], index: 0, kind: input, shape index: {}]   ;;  %s1548_s1 = inlined_call_operand.vmem [shape: f32[7,1,8], index: 1, kind: input, shape index: {}]   ;;  %s1549_s2 = inlined_call_operand.<no memory space> [shape: f32[1,1], index: 2, kind: input, shape index: {}]   ;;  %s1550_s3 = inlined_call_operand.hbm [shape: f32[2,1,38], index: 3, kind: output, shape index: {}]  }
   0x1   :  { %v8_v0 = vstv %s1549_s2 }
   0x2   :  { %9 = vst [vmem:[#allocation2] sm:$0x1] %v8_v0 }
   0x3   :  { %10 = vsyncpa [#allocation4], 0 }
   0x4   :  { %12 = vsyncpa [#allocation4 + $0x1], 0  ;;  %s1306_s14 = smov 0   ;;  %s1308_s15 = smov 0  }
   0x5   :  { %s1310_s16 = smov 0   ;;  %s1312_s17 = smov 0  }
   0x6 LB: > { %s1327_s2 = sadd.s32 4294967295, %s1276_s17   ;;  %s922_s18 = sadd.s32 4294967294, %s1276_s17   ;;  %s1276_s17 = sphi %s1312_s17, %s1558_s17   ;;  %s1272_s16 = sphi %s1310_s16, %s1557_s16   ;;  %s1268_s15 = sphi %s1308_s15, %s1556_s15   ;;  %s1264_s14 = sphi %s1306_s14, %s1555_s14  }
   0x7   : > { %s1331_s19 = sadd.s32 1, %s1276_s17   ;;  %s93_s20 = sadd.s32 1, %s1272_s16 }
   0x8   : > { %s90_s21 = ssub.s32 %s1276_s17, %s1331_s19  ;;  %p103_p0 = scmp.ne.s32.totalorder %s1272_s16, %s1268_s15 }
   0x9   : > { %p91_p1 = scmp.eq.s32.totalorder %s90_s21, 0  ;;  %p104_p2 = scmp.eq.s32.totalorder %s1327_s2, 1 }
   0xa   : > { %p109_p3 = scmp.ne.s32.totalorder %s1268_s15, %s1264_s14  ;;  %p110_p4 = scmp.eq.s32.totalorder %s922_s18, 1 }
   0xb   : > { %s1342_s22 = scalar_select %p91_p1, %s1272_s16, %s93_s20  }
   0xc   : > { %p1344_p5 = por %p104_p2, %p103_p0  ;;  %p1348_p6 = por %p110_p4, %p109_p3 }
   0xd   : > { %p925_p7 = scmp.ge.s32.totalorder %s1276_s17, 1  ;;  %p142_p8 = scmp.lt.s32.totalorder %s1276_s17, 3 }
   0xf   : > { %p143_p9 = pnand %p925_p7, %p142_p8 }
  0x10   : > { %p165_p10 = scmp.lt.s32.totalorder (!%p143_p9), %s1327_s2, 1  ;;  %v1278_v1 = vmov (!%p143_p9), 0.0|0.0   ;;  %vm1279_vm0 = vmmov (!%p143_p9), 0   ;;  %v1280_v2 = vmov (!%p143_p9), 0.0   ;;  %vm183_vm1 = vcmask (!%p143_p9), 64512  }
  0x11   : > { %146 = sbr.rel (%p143_p9) target bundleno = 352 (0x160), region = 32  ;;  %1111 = vmatprep.subr.bf16.mxu0 (!%p143_p9), %v1278_v1  ;;  %1119 = vmatprep.subr.bf16.mxu1 (!%p143_p9), %v1278_v1  ;;  %v1281_v3 = vmov (!%p143_p9), 0   ;;  %v840_v4 = vld [vmem:[#allocation2] sm:$0x1] (!%p143_p9)  ;;  %vm1369_vm2 = vmpackc.low (!%p143_p9), %vm183_vm1, %vm183_vm1  ;;  %v927_v24 = vld [vmem:[%s1548_s1 + $0x1] sm:$0x1] (!%p143_p9) }
  0x12   : > { %1030 = vmatprep.mubr.msk.f32.mxu0 (!%p143_p9), %vm1279_vm0, %v1280_v2  ;;  %1043 = vmatprep.mubr.msk.f32.mxu1 (!%p143_p9), %vm1279_vm0, %v1280_v2  ;;  %v170_v26 = vld [vmem:[%s1548_s1] sm:$0x1] (!%p143_p9)  ;;  %v940_v40 = vld [vmem:[%s1548_s1 + $0x2] sm:$0x1] (!%p143_p9)  ;;  %v947_v42 = vld [vmem:[%s1548_s1 + $0x3] sm:$0x1] (!%p143_p9) }
  0x13   : > { %1211 = vset.pattern.permute.xlu0 (!%p143_p9), %v1281_v3  ;;  %v954_v54 = vld [vmem:[%s1548_s1 + $0x4] sm:$0x1] (!%p143_p9)  ;;  %v961_v56 = vld [vmem:[%s1548_s1 + $0x5] sm:$0x1] (!%p143_p9)  ;;  %v968_v61 = vld [vmem:[%s1548_s1 + $0x6] sm:$0x1] (!%p143_p9) }
  0x14   : > { %843 = vperm.xlu0 (!%p143_p9), %1211, %v840_v4   ;;  %vm852_vm3 = vcmask (!%p143_p9), 303104  }
  0x18   : > { %s166_s25 = scalar_select %p165_p10, %s1327_s2, 1 }
  0x1a   : > { %s1167_s26 = smul.u32 48, %s166_s25  ;;  %s163_s25 = sand.u32 1, %s1268_s15  }
  0x1b   : > { %s164_s27 = scalar_lea.vmem [#allocation3], %s163_s25  ;;  %s855_s5 = scalar_lea.sflag [#allocation4], %s163_s25 }
  0x1c   : > { %s1365_s29 = scalar_lea.vmem %s1547_s0, %s1167_s26  ;;  %s975_s26 = sshll.u32 %s1327_s2, 4 }
  0x1d   : > { %v178_v6 = vld [vmem:[%s1365_s29 + $0x1] sm:$0xff]  ;;  %v179_v7 = vld [vmem:[%s1365_s29 + $0x9] sm:$0xff]  ;;  %v180_v12 = vld [vmem:[%s1365_s29 + $0x11] sm:$0xff]  ;;  %s867_s28 = sshll.u32 %s164_s27, 4  ;;  %s1505_s4 = scalar_lea.hbm %s1550_s3, %s975_s26  ;;  %s1507_s28 = int_to_ptr.vmem [resolvable:$true] %s867_s28 }
  0x1e   : > { %v171_v8 = vld [vmem:[%s1365_s29] sm:$0xff]  ;;  %v1112_v9 = vpack.c.bf16 %v179_v7, %v178_v6  ;;  %v172_v10 = vld [vmem:[%s1365_s29 + $0x8] sm:$0xff]  ;;  %v173_v14 = vld [vmem:[%s1365_s29 + $0x10] sm:$0xff]  ;;  %s1214_s6 = scalar_lea.vmem %s1507_s28, 16  ;;  %s1282_s2 = smov [#allocation3]  }
  0x1f   : > { %v1120_v11 = vpack.c.bf16 %v172_v10, %v171_v8  ;;  %v181_v13 = vld [vmem:[%s1365_s29 + $0x19] sm:$0xff]  ;;  %v182_v18 = vld [vmem:[%s1365_s29 + $0x21] sm:$0x3f]  ;;  %v363_v20 = vld [vmem:[%s1365_s29 + $0xa] sm:$0xff]  ;;  %p1215_p11 = scmp.ne.s32.totalorder %s1507_s28, %s1214_s6  ;;  %s1218_s7 = sshll.u32 %s1282_s2, 4  ;;  %s1219_s7 = int_to_ptr.vmem [resolvable:$false] %s1218_s7 }
  0x20   : > { %1114 = vmatpush3.bf16.xpose.msk.msra.mxu0 %vm1369_vm2, %v1112_v9  ;;  %v174_v15 = vld [vmem:[%s1365_s29 + $0x18] sm:$0xff]  ;;  %v1116_v16 = vpack.c.bf16 %v181_v13, %v180_v12  ;;  %v362_v19 = vld [vmem:[%s1365_s29 + $0x2] sm:$0xff]  ;;  %v459_v23 = vld [vmem:[%s1365_s29 + $0xb] sm:$0xff]  ;;  %s1220_s8 = scalar_lea.vmem %s1219_s7, 32  ;;  %p1221_p0 = scmp.lt.s32.totalorder %s1507_s28, %s1219_s7 }
  0x21   : > { %1122 = vmatpush3.bf16.xpose.msk.msra.mxu1 %vm1369_vm2, %v1120_v11  ;;  %1115 = vmatprep.subr.bf16.mxu0 %v1278_v1  ;;  %v1124_v17 = vpack.c.bf16 %v174_v15, %v173_v14  ;;  %v175_v21 = vld [vmem:[%s1365_s29 + $0x20] sm:$0x3f]  ;;  %v1128_v25 = vpack.c.bf16 %v363_v20, %v362_v19  ;;  %v364_v28 = vld [vmem:[%s1365_s29 + $0x12] sm:$0xff]  ;;  %v746_v51 = vld [vmem:[%s1365_s29 + $0x6] sm:$0xff]  ;;  %v846_v15 = vlaneseq  ;;  %p1216_p12 = pnand %p1215_p11, %p1344_p5  ;;  %p1222_p1 = scmp.lt.s32.totalorder %s1220_s8, %s1214_s6 }
  0x22   : > { %1123 = vmatprep.subr.bf16.mxu1 %v1278_v1  ;;  %v458_v22 = vld [vmem:[%s1365_s29 + $0x3] sm:$0xff]  ;;  %v365_v29 = vld [vmem:[%s1365_s29 + $0x1a] sm:$0xff]  ;;  %v555_v36 = vld [vmem:[%s1365_s29 + $0xc] sm:$0xff] }
  0x23   : > { %v1136_v27 = vpack.c.bf16 %v459_v23, %v458_v22  ;;  %v460_v30 = vld [vmem:[%s1365_s29 + $0x13] sm:$0xff]  ;;  %v461_v31 = vld [vmem:[%s1365_s29 + $0x1b] sm:$0xff]  ;;  %v1132_v32 = vpack.c.bf16 %v365_v29, %v364_v28  ;;  %v554_v35 = vld [vmem:[%s1365_s29 + $0x4] sm:$0xff]  ;;  %p1217_p13 = pneg %p1216_p12  ;;  %p1223_p2 = por %p1222_p1, %p1221_p0 }
  0x24   : > { %v1140_v33 = vpack.c.bf16 %v461_v31, %v460_v30  ;;  %v366_v34 = vld [vmem:[%s1365_s29 + $0x22] sm:$0x3f]  ;;  %v651_v39 = vld [vmem:[%s1365_s29 + $0xd] sm:$0xff]  ;;  %v1144_v41 = vpack.c.bf16 %v555_v36, %v554_v35  ;;  %v652_v46 = vld [vmem:[%s1365_s29 + $0x15] sm:$0xff] }
  0x25   : > { %v462_v37 = vld [vmem:[%s1365_s29 + $0x23] sm:$0x3f]  ;;  %v556_v44 = vld [vmem:[%s1365_s29 + $0x14] sm:$0xff]  ;;  %p1224_p3 = pnand %p1223_p2, %p1217_p13 }
  0x26   : > { %v650_v38 = vld [vmem:[%s1365_s29 + $0x5] sm:$0xff]  ;;  %v557_v45 = vld [vmem:[%s1365_s29 + $0x1c] sm:$0xff]  ;;  %v747_v52 = vld [vmem:[%s1365_s29 + $0xe] sm:$0xff] }
  0x27   : > { %v1152_v43 = vpack.c.bf16 %v651_v39, %v650_v38  ;;  %v653_v47 = vld [vmem:[%s1365_s29 + $0x1d] sm:$0xff]  ;;  %v1148_v48 = vpack.c.bf16 %v557_v45, %v556_v44  ;;  %v654_v53 = vld [vmem:[%s1365_s29 + $0x25] sm:$0x3f]  ;;  %v1160_v55 = vpack.c.bf16 %v747_v52, %v746_v51 }
  0x28   : > { %1118 = vmatpush3.bf16.xpose.msk.msra.mxu0 %vm1369_vm2, %v1116_v16  ;;  %v1156_v49 = vpack.c.bf16 %v653_v47, %v652_v46  ;;  %v558_v50 = vld [vmem:[%s1365_s29 + $0x24] sm:$0x3f]  ;;  %v748_v57 = vld [vmem:[%s1365_s29 + $0x16] sm:$0xff]  ;;  %v847_v16 = vshrl.u32 %v846_v15, 7 }
  0x29   : > { %1126 = vmatpush3.bf16.xpose.msk.msra.mxu1 %vm1369_vm2, %v1124_v17  ;;  %1028 = vmatprep.subr.mxu0 %v1280_v2  ;;  %v749_v58 = vld [vmem:[%s1365_s29 + $0x1e] sm:$0xff]  ;;  %v750_v60 = vld [vmem:[%s1365_s29 + $0x26] sm:$0x3f] }
  0x2a   : > { %1041 = vmatprep.subr.mxu1 %v1280_v2  ;;  %v1164_v59 = vpack.c.bf16 %v749_v58, %v748_v57  ;;  %v848_v17 = vsub.s32 0, %v847_v16 }
  0x30   : > { %1029 = vmatpush3.xpose.msk.msra.mxu0 %vm183_vm1, %v182_v18 }
  0x31   : > { %1042 = vmatpush3.xpose.msk.msra.mxu1 %vm183_vm1, %v175_v21  ;;  %1127 = vmatprep.subr.bf16.mxu0 %v1278_v1 }
  0x32   : > { %1135 = vmatprep.subr.bf16.mxu1 %v1278_v1 }
  0x33   : > { %1031 = vmatmul.mubr.msk.f32.vlgmr.msra.gmra.mrb[0].mxu0 %vm183_vm1, %v927_v24 }
  0x34   : > { %1044 = vmatmul.mubr.msk.f32.vlgmr.msra.gmra.mrb[0].mxu1 %vm183_vm1, %v170_v26  ;;  %1130 = vmatpush3.bf16.xpose.msk.msra.mxu0 %vm1369_vm2, %v1128_v25 }
  0x35   : > { %1138 = vmatpush3.bf16.xpose.msk.msra.mxu1 %vm1369_vm2, %v1136_v27  ;;  %1131 = vmatprep.subr.bf16.mxu0 %v1278_v1 }
  0x36   : > { %1139 = vmatprep.subr.bf16.mxu1 %v1278_v1  ;;  %1056 = vmatprep.mubr.msk.f32.mxu0 %vm1279_vm0, %v1280_v2 }
  0x37   : > { %1069 = vmatprep.mubr.msk.f32.mxu1 %vm1279_vm0, %v1280_v2 }
  0x3c   : > { %1134 = vmatpush3.bf16.xpose.msk.msra.mxu0 %vm1369_vm2, %v1132_v32 }
  0x3d   : > { %1142 = vmatpush3.bf16.xpose.msk.msra.mxu1 %vm1369_vm2, %v1140_v33  ;;  %1054 = vmatprep.subr.mxu0 %v1280_v2 }
  0x3e   : > { %1067 = vmatprep.subr.mxu1 %v1280_v2 }
  0x44   : > { %1055 = vmatpush3.xpose.msk.msra.mxu0 %vm183_vm1, %v366_v34 }
  0x45   : > { %1068 = vmatpush3.xpose.msk.msra.mxu1 %vm183_vm1, %v462_v37  ;;  %1143 = vmatprep.subr.bf16.mxu0 %v1278_v1 }
  0x46   : > { %1151 = vmatprep.subr.bf16.mxu1 %v1278_v1 }
  0x47   : > { %1057 = vmatmul.mubr.msk.f32.vlgmr.msra.gmra.mrb[2].mxu0 %vm183_vm1, %v940_v40 }
  0x48   : > { %1146 = vmatpush3.bf16.xpose.msk.msra.mxu0 %vm1369_vm2, %v1144_v41  ;;  %1070 = vmatmul.mubr.msk.f32.vlgmr.msra.gmra.mrb[2].mxu1 %vm183_vm1, %v947_v42 }
  0x49   : > { %1154 = vmatpush3.bf16.xpose.msk.msra.mxu1 %vm1369_vm2, %v1152_v43  ;;  %1147 = vmatprep.subr.bf16.mxu0 %v1278_v1 }
  0x4a   : > { %1155 = vmatprep.subr.bf16.mxu1 %v1278_v1  ;;  %1082 = vmatprep.mubr.msk.f32.mxu0 %vm1279_vm0, %v1280_v2 }
  0x4b   : > { %1095 = vmatprep.mubr.msk.f32.mxu1 %vm1279_vm0, %v1280_v2 }
  0x50   : > { %1150 = vmatpush3.bf16.xpose.msk.msra.mxu0 %vm1369_vm2, %v1148_v48 }
  0x51   : > { %1158 = vmatpush3.bf16.xpose.msk.msra.mxu1 %vm1369_vm2, %v1156_v49  ;;  %1080 = vmatprep.subr.mxu0 %v1280_v2 }
  0x52   : > { %1093 = vmatprep.subr.mxu1 %v1280_v2 }
  0x58   : > { %1081 = vmatpush3.xpose.msk.msra.mxu0 %vm183_vm1, %v558_v50 }
  0x59   : > { %1094 = vmatpush3.xpose.msk.msra.mxu1 %vm183_vm1, %v654_v53  ;;  %1159 = vmatprep.subr.bf16.mxu0 %v1278_v1 }
  0x5b   : > { %1083 = vmatmul.mubr.msk.f32.vlgmr.msra.gmra.mrb[4].mxu0 %vm183_vm1, %v954_v54 }
  0x5c   : > { %1162 = vmatpush3.bf16.xpose.msk.msra.mxu0 %vm1369_vm2, %v1160_v55  ;;  %1096 = vmatmul.mubr.msk.f32.vlgmr.msra.gmra.mrb[4].mxu1 %vm183_vm1, %v961_v56 }
  0x5d   : > { %1163 = vmatprep.subr.bf16.mxu0 %v1278_v1  ;;  %1108 = vmatprep.mubr.msk.f32.mxu0 %vm1279_vm0, %v1280_v2 }
  0x64   : > { %1166 = vmatpush3.bf16.xpose.msk.msra.mxu0 %vm1369_vm2, %v1164_v59 }
  0x65   : > { %1106 = vmatprep.subr.mxu0 %v1280_v2 }
  0x6c   : > { %1107 = vmatpush3.xpose.msk.msra.mxu0 %vm183_vm1, %v750_v60 }
  0x6f   : > { %1109 = vmatmul.mubr.msk.f32.vlgmr.msra.gmra.mrb[6].mxu0 %vm183_vm1, %v968_v61 }
  0x93   : > { %v844_v18 = vpop.permute.xlu0 %843 }
  0x94   : > { %v849_v19 = vrot.slane %v844_v18, %v848_v17 }
 0x106   : > { %v268_v62 = vpop.f32.mrb[0].mxu0 }
 0x107   : > { %v1032_v63 = vpop.f32.mrb[1].mxu0  ;;  %v356_v0 = vpop.f32.mrb[0].mxu1 }
 0x108   : > { %v357_v1 = vadd.f32 %v356_v0, %v268_v62  ;;  %v1045_v3 = vpop.f32.mrb[1].mxu1 }
 0x11a   : > { %v451_v4 = vpop.f32.mrb[2].mxu0 }
 0x11b   : > { %v455_v6 = vadd.f32 %v451_v4, %v357_v1  ;;  %v1058_v5 = vpop.f32.mrb[3].mxu0  ;;  %v547_v7 = vpop.f32.mrb[2].mxu1 }
 0x11c   : > { %v1071_v8 = vpop.f32.mrb[3].mxu1 }
 0x11d   : > { %v551_v2 = vadd.f32 %v547_v7, %v455_v6 }
 0x12e   : > { %v643_v9 = vpop.f32.mrb[4].mxu0 }
 0x12f   : > { %v647_v10 = vadd.f32 %v643_v9, %v551_v2  ;;  %v1084_v11 = vpop.f32.mrb[5].mxu0  ;;  %v739_v12 = vpop.f32.mrb[4].mxu1 }
 0x130   : > { %v1097_v13 = vpop.f32.mrb[5].mxu1 }
 0x131   : > { %v743_v14 = vadd.f32 %v739_v12, %v647_v10 }
 0x142   : > { %v835_v20 = vpop.f32.mrb[6].mxu0 }
 0x143   : > { %v839_v21 = vadd.f32 %v835_v20, %v743_v14  ;;  %v1110_v22 = vpop.f32.mrb[7].mxu0 }
 0x145   : > { %v850_v23 = vadd.f32 %v849_v19, %v839_v21 }
 0x147   : > { %1212 = vtanh.f32 %v850_v23 }
 0x151   : > { %v1213_v24 = vpop.eup %1212 }
 0x152   : > { %853 = vst.msk [vmem:[%s164_s27] sm:$0x1] %vm852_vm3, %v1213_v24 }
 0x153   : > { %1227 = shalt.err (!%p1224_p3)
}
 0x154   : > { %s1228_s9 = scalar_lea.hbm %s1505_s4, 16  ;;  %s1232_s12 = scalar_lea.hbm %s1550_s3, 32 }
 0x155   : > { %p1229_p4 = scmp.ne.s32.totalorder %s1505_s4, %s1228_s9  ;;  %p1233_p9 = scmp.lt.u32.totalorder %s1505_s4, %s1550_s3 }
 0x156   : > { %p1234_p10 = scmp.lt.u32.totalorder %s1232_s12, %s1228_s9  ;;  %p1236_p12 = scmp.lt.u32.totalorder %s1228_s9, %s1505_s4 }
 0x157   : > { %p1230_p7 = pnand %p1229_p4, %p1344_p5 }
 0x158   : > { %p1235_p11 = por %p1234_p10, %p1233_p9 }
 0x159   : > { %p1231_p8 = pneg %p1230_p7 }
 0x15a   : > { %p1237_p13 = por %p1236_p12, %p1235_p11 }
 0x15c   : > { %p1238_p0 = pnand %p1237_p13, %p1231_p8 }
 0x15e   : > { %1241 = shalt.err (!%p1238_p0)
}
 0x15f   : > { %1168 = dma.vmem_to_hbm [thread:$0]  (%p1344_p5), %s1507_s28, 16, %s1505_s4, %s855_s5  }
 0x160 PF: > { %p1174_p1 = scmp.ge.s32.totalorder %s1276_s17, 2  ;;  %s879_s20 = sand.u32 1, %s1264_s14  }
 0x161   : > { %s880_s21 = scalar_lea.sflag [#allocation4], %s879_s20 }
 0x162   : > { %p1171_p2 = pnand %p1174_p1, %p1348_p6 }
 0x164   : > { %1259 = dma.done.wait (!%p1171_p2), %s880_s21, 16  }
 0x165   : > { %1261 = vsyncadd (!%p1171_p2), %s880_s21, 4294967280  ;;  %p15_p3 = scmp.ge.s32.totalorder %s1331_s19, 4   ;;  %s1555_s14 = smov %s1268_s15 }
 0x166   : > { %s1556_s15 = smov %s1272_s16  ;;  %s1557_s16 = smov %s1342_s22 }
 0x167   : > { %s1558_s17 = smov %s1331_s19  ;;  %17 = sbr.rel (!%p15_p3) target bundleno = 6 (0x6), region = 73 }
 0x16e   :  { %884 = vsyncpa [#allocation4], 1 }
 0x16f   :  { %886 = vsyncpa [#allocation4 + $0x1], 1 }

</bundles_post_ra>
